<compile_context>
chip_gen: v6e
topology: v6e:2x2x1
jax: 0.10.0
libtpu: 0.0.40
codegen_flags: <defaults>
</compile_context>

<pallas_src>
import jax
import jax.numpy as jnp
from jax.experimental import pallas as pl
from jax.experimental.pallas import tpu as pltpu

EPS = 1e-5       # BatchNorm2d default eps
POL_PAD = 128    # lane-dense padding for the 80-channel policy head


def network_kernel(xcol_ref,
                   w_in_ref, beta_in_ref,
                   w_h1_ref, beta_h1_ref,     # fused policy_conv + value_conv (head-1)
                   w_p2_ref, beta_p2_ref,     # policy_conv2, padded to 128 lanes
                   w_v2_ref, beta_v2_ref,     # value_conv2
                   w_fc_ref, b_fc_ref,        # value_fc
                   pol_ref, val_ref):
    """Whole forward pass; all tensors fit comfortably in VMEM at these sizes."""

    def conv_block(x_bf16, w_ref, beta_ref, relu):
        # conv (as bf16 matmul, f32 accum) -> BN(affine=False, batch stats) -> +beta -> relu
        y = jnp.dot(x_bf16, w_ref[...], preferred_element_type=jnp.float32)
        n_inv = 1.0 / y.shape[0]
        # single-pass stats: mu = E[y], var = E[y^2] - mu^2 (f32, biased var as in training BN)
        mu = jnp.sum(y, axis=0, keepdims=True) * n_inv
        var = jnp.maximum(jnp.sum(y * y, axis=0, keepdims=True) * n_inv - mu * mu, 0.0)
        scale = jax.lax.rsqrt(var + EPS)
        y = y * scale + (beta_ref[...] - mu * scale)        # one mul + one add per element
        return jnp.maximum(y, 0.0) if relu else y

    C = w_h1_ref.shape[0]                                   # residual_channels

    # conv_input: 3x3 ConvBlock (im2col'd) ------------------------------------
    x = conv_block(xcol_ref[...], w_in_ref, beta_in_ref, relu=True)    # (B*H*W, C) f32
    x_bf = x.astype(jnp.bfloat16)

    # residual_tower = nn.Sequential() -> identity ----------------------------

    # fused head-1: policy_conv (C->C) and value_conv (C->32) in one matmul ----
    h = conv_block(x_bf, w_h1_ref, beta_h1_ref, relu=True)             # (B*H*W, C+32)
    p = h[:, :C]                                                       # policy branch
    v = h[:, C:]                                                       # value branch

    # policy head 2: 1x1 ConvBlock, lane-padded to 128 output channels --------
    p2 = conv_block(p.astype(jnp.bfloat16), w_p2_ref, beta_p2_ref, relu=True)
    pol_ref[...] = p2                                                  # (B*H*W, 128)

    # value head 2: 1x1 ConvBlock (no relu in block), F.relu, GAP, FC, softmax -
    v2 = conv_block(v.astype(jnp.bfloat16), w_v2_ref, beta_v2_ref, relu=False)
    v2 = jnp.maximum(v2, 0.0)                                          # F.relu

    B = val_ref.shape[0]
    HW = v2.shape[0] // B
    pooled = jnp.mean(v2.reshape(B, HW, v2.shape[1]), axis=1)          # (B, 128) spatial mean
    logits = jnp.dot(pooled.astype(jnp.bfloat16), w_fc_ref[...],
                     preferred_element_type=jnp.float32) + b_fc_ref[...]   # (B, 3)
    m = jnp.max(logits, axis=-1, keepdims=True)
    e = jnp.exp(logits - m)
    val_ref[...] = e / jnp.sum(e, axis=-1, keepdims=True)


def network_forward(x_nchw, params):
    B, Cin, H, W = x_nchw.shape
    x = jnp.transpose(x_nchw, (0, 2, 3, 1)).astype(jnp.float32)        # NHWC
    xpad = jnp.pad(x, ((0, 0), (1, 1), (1, 1), (0, 0)))
    # im2col for the 3x3 / pad=1 stem conv: tap-major, then channel
    cols = [xpad[:, dy:dy + H, dx:dx + W, :] for dy in range(3) for dx in range(3)]
    xcol = jnp.concatenate(cols, axis=-1).reshape(B * H * W, 9 * Cin).astype(jnp.bfloat16)

    (w_in, beta_in, w_p1, beta_p1, w_p2, beta_p2,
     w_v1, beta_v1, w_v2, beta_v2, w_fc, b_fc) = params

    C = w_p1.shape[0]
    n_pol = w_p2.shape[1]                                              # 80

    # fuse head-1 weights: (C, C) ++ (C, 32) -> (C, C+32)
    w_h1 = jnp.concatenate([w_p1, w_v1], axis=1).astype(jnp.bfloat16)
    beta_h1 = jnp.concatenate([beta_p1, beta_v1], axis=1)

    # lane-pad policy_conv2 to 128 output channels (zero columns -> zero output)
    w_p2p = jnp.pad(w_p2, ((0, 0), (0, POL_PAD - n_pol))).astype(jnp.bfloat16)
    beta_p2p = jnp.pad(beta_p2, ((0, 0), (0, POL_PAD - n_pol)))

    inputs = (xcol,
              w_in.astype(jnp.bfloat16), beta_in,
              w_h1, beta_h1,
              w_p2p, beta_p2p,
              w_v2.astype(jnp.bfloat16), beta_v2,
              w_fc.astype(jnp.bfloat16), b_fc)

    pol2d, val = pl.pallas_call(
        network_kernel,
        out_shape=(jax.ShapeDtypeStruct((B * H * W, POL_PAD), jnp.float32),
                   jax.ShapeDtypeStruct((B, 3), jnp.float32)),
        in_specs=[pl.BlockSpec(memory_space=pltpu.MemorySpace.VMEM)] * len(inputs),
        out_specs=(pl.BlockSpec(memory_space=pltpu.MemorySpace.VMEM),
                   pl.BlockSpec(memory_space=pltpu.MemorySpace.VMEM)),
        compiler_params=pltpu.CompilerParams(vmem_limit_bytes=32 * 1024 * 1024),
    )(*inputs)

    # match torch.flatten(pol, start_dim=1) on NCHW: channel-major flatten
    pol = (pol2d[:, :n_pol].reshape(B, H, W, n_pol)
           .transpose(0, 3, 1, 2).reshape(B, n_pol * H * W))
    return pol, val


def init_params(key, in_channels, residual_channels):
    C = residual_channels
    ks = jax.random.split(key, 8)

    def kaiming(k, shape, fan_out):
        # kaiming_normal_(mode='fan_out', nonlinearity='relu')
        return jax.random.normal(k, shape, jnp.float32) * jnp.sqrt(2.0 / fan_out)

    w_in = kaiming(ks[0], (9 * in_channels, C), fan_out=9 * C)   # 3x3 conv: (kh*kw*Cin, Cout)
    beta_in = jnp.zeros((1, C), jnp.float32)
    w_p1 = kaiming(ks[1], (C, C), fan_out=C)                     # 1x1 convs: (Cin, Cout)
    beta_p1 = jnp.zeros((1, C), jnp.float32)
    w_p2 = kaiming(ks[2], (C, 80), fan_out=80)
    beta_p2 = jnp.zeros((1, 80), jnp.float32)
    w_v1 = kaiming(ks[3], (C, 32), fan_out=32)
    beta_v1 = jnp.zeros((1, 32), jnp.float32)
    w_v2 = kaiming(ks[4], (32, 128), fan_out=128)
    beta_v2 = jnp.zeros((1, 128), jnp.float32)
    bound = 1.0 / jnp.sqrt(128.0)                                # nn.Linear default init
    w_fc = jax.random.uniform(ks[5], (128, 3), jnp.float32, -bound, bound)
    b_fc = jax.random.uniform(ks[6], (1, 3), jnp.float32, -bound, bound)
    return (w_in, beta_in, w_p1, beta_p1, w_p2, beta_p2,
            w_v1, beta_v1, w_v2, beta_v2, w_fc, b_fc)


if __name__ == "__main__":
    key = jax.random.PRNGKey(0)
    k_x, k_p = jax.random.split(key)

    # Network(in_channels=4, residual_channels=32, residual_layers=0-equivalent)
    B, Cin, H, W = 2, 4, 8, 8
    C = 32
    planes = jax.random.normal(k_x, (B, Cin, H, W), jnp.float32)
    params = init_params(k_p, Cin, C)

    pol, val = jax.jit(network_forward)(planes, params)
    jax.block_until_ready((pol, val))

    assert pol.shape == (B, 80 * H * W)
    assert val.shape == (B, 3)
    assert bool(jnp.all(jnp.isfinite(pol))) and bool(jnp.all(jnp.isfinite(val)))
    print("KERNEL_OK")
</pallas_src>

<mosaic_0001>
module attributes {stable_mosaic.version = 11 : i64} {
  func.func @network_kernel(%arg0: memref<128x36xbf16, #tpu.memory_space<vmem>>, %arg1: memref<36x32xbf16, #tpu.memory_space<vmem>>, %arg2: memref<1x32xf32, #tpu.memory_space<vmem>>, %arg3: memref<32x64xbf16, #tpu.memory_space<vmem>>, %arg4: memref<1x64xf32, #tpu.memory_space<vmem>>, %arg5: memref<32x128xbf16, #tpu.memory_space<vmem>>, %arg6: memref<1x128xf32, #tpu.memory_space<vmem>>, %arg7: memref<32x128xbf16, #tpu.memory_space<vmem>>, %arg8: memref<1x128xf32, #tpu.memory_space<vmem>>, %arg9: memref<128x3xbf16, #tpu.memory_space<vmem>>, %arg10: memref<1x3xf32, #tpu.memory_space<vmem>>, %arg11: memref<128x128xf32, #tpu.memory_space<vmem>>, %arg12: memref<2x3xf32, #tpu.memory_space<vmem>>) attributes {dimension_semantics = [], scalar_prefetch = 0 : i64, scratch_operands = 0 : i64, tpu.core_type = #tpu.core_type<tc>} {
    %c0 = arith.constant 0 : index
    %c0_0 = arith.constant 0 : index
    %0 = vector.load %arg0[%c0, %c0_0] : memref<128x36xbf16, #tpu.memory_space<vmem>>, vector<128x36xbf16>
    %c0_1 = arith.constant 0 : index
    %c0_2 = arith.constant 0 : index
    %1 = vector.load %arg1[%c0_1, %c0_2] : memref<36x32xbf16, #tpu.memory_space<vmem>>, vector<36x32xbf16>
    %cst = arith.constant dense<0.000000e+00> : vector<128x32xf32>
    %2 = tpu.matmul %0, %1, %cst {dimension_numbers = #tpu.dot_dimension_numbers<[1], [0], [0], [1], [0, 0, 1, 1], [], []>} : vector<128x36xbf16>, vector<36x32xbf16>, vector<128x32xf32> -> vector<128x32xf32>
    %cst_3 = arith.constant dense<0.000000e+00> : vector<32xf32>
    %3 = vector.multi_reduction <add>, %2, %cst_3 [0] : vector<128x32xf32> to vector<32xf32>
    %4 = vector.shape_cast %3 : vector<32xf32> to vector<1x32xf32>
    %cst_4 = arith.constant 7.812500e-03 : f32
    %5 = vector.broadcast %cst_4 : f32 to vector<1x32xf32>
    %6 = arith.mulf %4, %5 : vector<1x32xf32>
    %7 = arith.mulf %2, %2 : vector<128x32xf32>
    %cst_5 = arith.constant dense<0.000000e+00> : vector<32xf32>
    %8 = vector.multi_reduction <add>, %7, %cst_5 [0] : vector<128x32xf32> to vector<32xf32>
    %9 = vector.shape_cast %8 : vector<32xf32> to vector<1x32xf32>
    %cst_6 = arith.constant 7.812500e-03 : f32
    %10 = vector.broadcast %cst_6 : f32 to vector<1x32xf32>
    %11 = arith.mulf %9, %10 : vector<1x32xf32>
    %12 = arith.mulf %6, %6 : vector<1x32xf32>
    %13 = arith.subf %11, %12 : vector<1x32xf32>
    %cst_7 = arith.constant 0.000000e+00 : f32
    %14 = vector.broadcast %cst_7 : f32 to vector<1x32xf32>
    %15 = arith.maximumf %13, %14 : vector<1x32xf32>
    %cst_8 = arith.constant 9.99999974E-6 : f32
    %16 = vector.broadcast %cst_8 : f32 to vector<1x32xf32>
    %17 = arith.addf %15, %16 : vector<1x32xf32>
    %18 = math.rsqrt %17 : vector<1x32xf32>
    %19 = vector.broadcast %18 : vector<1x32xf32> to vector<128x32xf32>
    %20 = arith.mulf %2, %19 : vector<128x32xf32>
    %c0_9 = arith.constant 0 : index
    %c0_10 = arith.constant 0 : index
    %21 = vector.load %arg2[%c0_9, %c0_10] : memref<1x32xf32, #tpu.memory_space<vmem>>, vector<1x32xf32>
    %22 = arith.mulf %6, %18 : vector<1x32xf32>
    %23 = arith.subf %21, %22 : vector<1x32xf32>
    %24 = vector.broadcast %23 : vector<1x32xf32> to vector<128x32xf32>
    %25 = arith.addf %20, %24 : vector<128x32xf32>
    %cst_11 = arith.constant 0.000000e+00 : f32
    %26 = vector.broadcast %cst_11 : f32 to vector<128x32xf32>
    %27 = arith.maximumf %25, %26 : vector<128x32xf32>
    %28 = arith.truncf %27 : vector<128x32xf32> to vector<128x32xbf16>
    %c0_12 = arith.constant 0 : index
    %c0_13 = arith.constant 0 : index
    %29 = vector.load %arg3[%c0_12, %c0_13] : memref<32x64xbf16, #tpu.memory_space<vmem>>, vector<32x64xbf16>
    %cst_14 = arith.constant dense<0.000000e+00> : vector<128x64xf32>
    %30 = tpu.matmul %28, %29, %cst_14 {dimension_numbers = #tpu.dot_dimension_numbers<[1], [0], [0], [1], [0, 0, 1, 1], [], []>} : vector<128x32xbf16>, vector<32x64xbf16>, vector<128x64xf32> -> vector<128x64xf32>
    %cst_15 = arith.constant dense<0.000000e+00> : vector<64xf32>
    %31 = vector.multi_reduction <add>, %30, %cst_15 [0] : vector<128x64xf32> to vector<64xf32>
    %32 = vector.shape_cast %31 : vector<64xf32> to vector<1x64xf32>
    %cst_16 = arith.constant 7.812500e-03 : f32
    %33 = vector.broadcast %cst_16 : f32 to vector<1x64xf32>
    %34 = arith.mulf %32, %33 : vector<1x64xf32>
    %35 = arith.mulf %30, %30 : vector<128x64xf32>
    %cst_17 = arith.constant dense<0.000000e+00> : vector<64xf32>
    %36 = vector.multi_reduction <add>, %35, %cst_17 [0] : vector<128x64xf32> to vector<64xf32>
    %37 = vector.shape_cast %36 : vector<64xf32> to vector<1x64xf32>
    %cst_18 = arith.constant 7.812500e-03 : f32
    %38 = vector.broadcast %cst_18 : f32 to vector<1x64xf32>
    %39 = arith.mulf %37, %38 : vector<1x64xf32>
    %40 = arith.mulf %34, %34 : vector<1x64xf32>
    %41 = arith.subf %39, %40 : vector<1x64xf32>
    %cst_19 = arith.constant 0.000000e+00 : f32
    %42 = vector.broadcast %cst_19 : f32 to vector<1x64xf32>
    %43 = arith.maximumf %41, %42 : vector<1x64xf32>
    %cst_20 = arith.constant 9.99999974E-6 : f32
    %44 = vector.broadcast %cst_20 : f32 to vector<1x64xf32>
    %45 = arith.addf %43, %44 : vector<1x64xf32>
    %46 = math.rsqrt %45 : vector<1x64xf32>
    %47 = vector.broadcast %46 : vector<1x64xf32> to vector<128x64xf32>
    %48 = arith.mulf %30, %47 : vector<128x64xf32>
    %c0_21 = arith.constant 0 : index
    %c0_22 = arith.constant 0 : index
    %49 = vector.load %arg4[%c0_21, %c0_22] : memref<1x64xf32, #tpu.memory_space<vmem>>, vector<1x64xf32>
    %50 = arith.mulf %34, %46 : vector<1x64xf32>
    %51 = arith.subf %49, %50 : vector<1x64xf32>
    %52 = vector.broadcast %51 : vector<1x64xf32> to vector<128x64xf32>
    %53 = arith.addf %48, %52 : vector<128x64xf32>
    %cst_23 = arith.constant 0.000000e+00 : f32
    %54 = vector.broadcast %cst_23 : f32 to vector<128x64xf32>
    %55 = arith.maximumf %53, %54 : vector<128x64xf32>
    %56 = vector.extract_strided_slice %55 {offsets = [0, 0], sizes = [128, 32], strides = [1, 1]} : vector<128x64xf32> to vector<128x32xf32>
    %57 = vector.extract_strided_slice %55 {offsets = [0, 32], sizes = [128, 32], strides = [1, 1]} : vector<128x64xf32> to vector<128x32xf32>
    %58 = arith.truncf %56 : vector<128x32xf32> to vector<128x32xbf16>
    %c0_24 = arith.constant 0 : index
    %c0_25 = arith.constant 0 : index
    %59 = vector.load %arg5[%c0_24, %c0_25] : memref<32x128xbf16, #tpu.memory_space<vmem>>, vector<32x128xbf16>
    %cst_26 = arith.constant dense<0.000000e+00> : vector<128x128xf32>
    %60 = tpu.matmul %58, %59, %cst_26 {dimension_numbers = #tpu.dot_dimension_numbers<[1], [0], [0], [1], [0, 0, 1, 1], [], []>} : vector<128x32xbf16>, vector<32x128xbf16>, vector<128x128xf32> -> vector<128x128xf32>
    %cst_27 = arith.constant dense<0.000000e+00> : vector<128xf32>
    %61 = vector.multi_reduction <add>, %60, %cst_27 [0] : vector<128x128xf32> to vector<128xf32>
    %62 = vector.shape_cast %61 : vector<128xf32> to vector<1x128xf32>
    %cst_28 = arith.constant 7.812500e-03 : f32
    %63 = vector.broadcast %cst_28 : f32 to vector<1x128xf32>
    %64 = arith.mulf %62, %63 : vector<1x128xf32>
    %65 = arith.mulf %60, %60 : vector<128x128xf32>
    %cst_29 = arith.constant dense<0.000000e+00> : vector<128xf32>
    %66 = vector.multi_reduction <add>, %65, %cst_29 [0] : vector<128x128xf32> to vector<128xf32>
    %67 = vector.shape_cast %66 : vector<128xf32> to vector<1x128xf32>
    %cst_30 = arith.constant 7.812500e-03 : f32
    %68 = vector.broadcast %cst_30 : f32 to vector<1x128xf32>
    %69 = arith.mulf %67, %68 : vector<1x128xf32>
    %70 = arith.mulf %64, %64 : vector<1x128xf32>
    %71 = arith.subf %69, %70 : vector<1x128xf32>
    %cst_31 = arith.constant 0.000000e+00 : f32
    %72 = vector.broadcast %cst_31 : f32 to vector<1x128xf32>
    %73 = arith.maximumf %71, %72 : vector<1x128xf32>
    %cst_32 = arith.constant 9.99999974E-6 : f32
    %74 = vector.broadcast %cst_32 : f32 to vector<1x128xf32>
    %75 = arith.addf %73, %74 : vector<1x128xf32>
    %76 = math.rsqrt %75 : vector<1x128xf32>
    %77 = vector.broadcast %76 : vector<1x128xf32> to vector<128x128xf32>
    %78 = arith.mulf %60, %77 : vector<128x128xf32>
    %c0_33 = arith.constant 0 : index
    %c0_34 = arith.constant 0 : index
    %79 = vector.load %arg6[%c0_33, %c0_34] : memref<1x128xf32, #tpu.memory_space<vmem>>, vector<1x128xf32>
    %80 = arith.mulf %64, %76 : vector<1x128xf32>
    %81 = arith.subf %79, %80 : vector<1x128xf32>
    %82 = vector.broadcast %81 : vector<1x128xf32> to vector<128x128xf32>
    %83 = arith.addf %78, %82 : vector<128x128xf32>
    %cst_35 = arith.constant 0.000000e+00 : f32
    %84 = vector.broadcast %cst_35 : f32 to vector<128x128xf32>
    %85 = arith.maximumf %83, %84 : vector<128x128xf32>
    %c0_36 = arith.constant 0 : index
    %c0_37 = arith.constant 0 : index
    %86 = vector.load %arg11[%c0_36, %c0_37] : memref<128x128xf32, #tpu.memory_space<vmem>>, vector<128x128xf32>
    tpu.vector_store %arg11[%c0_36, %c0_37], %85 {strides = array<i32>} : memref<128x128xf32, #tpu.memory_space<vmem>>, vector<128x128xf32>,
    %87 = arith.truncf %57 : vector<128x32xf32> to vector<128x32xbf16>
    %c0_38 = arith.constant 0 : index
    %c0_39 = arith.constant 0 : index
    %88 = vector.load %arg7[%c0_38, %c0_39] : memref<32x128xbf16, #tpu.memory_space<vmem>>, vector<32x128xbf16>
    %cst_40 = arith.constant dense<0.000000e+00> : vector<128x128xf32>
    %89 = tpu.matmul %87, %88, %cst_40 {dimension_numbers = #tpu.dot_dimension_numbers<[1], [0], [0], [1], [0, 0, 1, 1], [], []>} : vector<128x32xbf16>, vector<32x128xbf16>, vector<128x128xf32> -> vector<128x128xf32>
    %cst_41 = arith.constant dense<0.000000e+00> : vector<128xf32>
    %90 = vector.multi_reduction <add>, %89, %cst_41 [0] : vector<128x128xf32> to vector<128xf32>
    %91 = vector.shape_cast %90 : vector<128xf32> to vector<1x128xf32>
    %cst_42 = arith.constant 7.812500e-03 : f32
    %92 = vector.broadcast %cst_42 : f32 to vector<1x128xf32>
    %93 = arith.mulf %91, %92 : vector<1x128xf32>
    %94 = arith.mulf %89, %89 : vector<128x128xf32>
    %cst_43 = arith.constant dense<0.000000e+00> : vector<128xf32>
    %95 = vector.multi_reduction <add>, %94, %cst_43 [0] : vector<128x128xf32> to vector<128xf32>
    %96 = vector.shape_cast %95 : vector<128xf32> to vector<1x128xf32>
    %cst_44 = arith.constant 7.812500e-03 : f32
    %97 = vector.broadcast %cst_44 : f32 to vector<1x128xf32>
    %98 = arith.mulf %96, %97 : vector<1x128xf32>
    %99 = arith.mulf %93, %93 : vector<1x128xf32>
    %100 = arith.subf %98, %99 : vector<1x128xf32>
    %cst_45 = arith.constant 0.000000e+00 : f32
    %101 = vector.broadcast %cst_45 : f32 to vector<1x128xf32>
    %102 = arith.maximumf %100, %101 : vector<1x128xf32>
    %cst_46 = arith.constant 9.99999974E-6 : f32
    %103 = vector.broadcast %cst_46 : f32 to vector<1x128xf32>
    %104 = arith.addf %102, %103 : vector<1x128xf32>
    %105 = math.rsqrt %104 : vector<1x128xf32>
    %106 = vector.broadcast %105 : vector<1x128xf32> to vector<128x128xf32>
    %107 = arith.mulf %89, %106 : vector<128x128xf32>
    %c0_47 = arith.constant 0 : index
    %c0_48 = arith.constant 0 : index
    %108 = vector.load %arg8[%c0_47, %c0_48] : memref<1x128xf32, #tpu.memory_space<vmem>>, vector<1x128xf32>
    %109 = arith.mulf %93, %105 : vector<1x128xf32>
    %110 = arith.subf %108, %109 : vector<1x128xf32>
    %111 = vector.broadcast %110 : vector<1x128xf32> to vector<128x128xf32>
    %112 = arith.addf %107, %111 : vector<128x128xf32>
    %cst_49 = arith.constant 0.000000e+00 : f32
    %113 = vector.broadcast %cst_49 : f32 to vector<128x128xf32>
    %114 = arith.maximumf %112, %113 : vector<128x128xf32>
    %115 = vector.shape_cast %114 : vector<128x128xf32> to vector<2x64x128xf32>
    %cst_50 = arith.constant dense<0.000000e+00> : vector<2x128xf32>
    %116 = vector.multi_reduction <add>, %115, %cst_50 [1] : vector<2x64x128xf32> to vector<2x128xf32>
    %cst_51 = arith.constant 6.400000e+01 : f32
    %117 = vector.broadcast %cst_51 : f32 to vector<2x128xf32>
    %118 = arith.divf %116, %117 : vector<2x128xf32>
    %119 = arith.truncf %118 : vector<2x128xf32> to vector<2x128xbf16>
    %c0_52 = arith.constant 0 : index
    %c0_53 = arith.constant 0 : index
    %120 = vector.load %arg9[%c0_52, %c0_53] : memref<128x3xbf16, #tpu.memory_space<vmem>>, vector<128x3xbf16>
    %cst_54 = arith.constant dense<0.000000e+00> : vector<2x3xf32>
    %121 = tpu.matmul %119, %120, %cst_54 {dimension_numbers = #tpu.dot_dimension_numbers<[1], [0], [0], [1], [0, 0, 1, 1], [], []>} : vector<2x128xbf16>, vector<128x3xbf16>, vector<2x3xf32> -> vector<2x3xf32>
    %c0_55 = arith.constant 0 : index
    %c0_56 = arith.constant 0 : index
    %122 = vector.load %arg10[%c0_55, %c0_56] : memref<1x3xf32, #tpu.memory_space<vmem>>, vector<1x3xf32>
    %123 = vector.broadcast %122 : vector<1x3xf32> to vector<2x3xf32>
    %124 = arith.addf %121, %123 : vector<2x3xf32>
    %cst_57 = arith.constant dense<0xFF800000> : vector<2xf32>
    %125 = vector.multi_reduction <maximumf>, %124, %cst_57 [1] : vector<2x3xf32> to vector<2xf32>
    %126 = vector.shape_cast %125 : vector<2xf32> to vector<2x1xf32>
    %127 = vector.broadcast %126 : vector<2x1xf32> to vector<2x3xf32>
    %128 = arith.subf %124, %127 : vector<2x3xf32>
    %129 = math.exp %128 : vector<2x3xf32>
    %cst_58 = arith.constant dense<0.000000e+00> : vector<2xf32>
    %130 = vector.multi_reduction <add>, %129, %cst_58 [1] : vector<2x3xf32> to vector<2xf32>
    %131 = vector.shape_cast %130 : vector<2xf32> to vector<2x1xf32>
    %132 = vector.broadcast %131 : vector<2x1xf32> to vector<2x3xf32>
    %133 = arith.divf %129, %132 : vector<2x3xf32>
    %c0_59 = arith.constant 0 : index
    %c0_60 = arith.constant 0 : index
    %134 = vector.load %arg12[%c0_59, %c0_60] : memref<2x3xf32, #tpu.memory_space<vmem>>, vector<2x3xf32>
    tpu.vector_store %arg12[%c0_59, %c0_60], %133 {strides = array<i32>} : memref<2x3xf32, #tpu.memory_space<vmem>>, vector<2x3xf32>,
    return
  }
}

</mosaic_0001>

<bundles_post_ra>
// kernel: network_forward.1
= control target key start
LH: loop header
LB: loop body
LE: loop exit
PB: predicated region body
PF: predicated region fallthrough
CT: control target
= control target key end

     0   :  { %vm143_vm0 = vcmask 1041408   ;;  %vm118_vm1 = vcmask 293888   ;;  %s2367_s0 = inlined_call_operand.vmem [shape: bf16[128,36], index: 0, kind: input, shape index: {}]   ;;  %s2368_s1 = inlined_call_operand.vmem [shape: bf16[36,32], index: 1, kind: input, shape index: {}]   ;;  %s2369_s2 = inlined_call_operand.vmem [shape: f32[1,32], index: 2, kind: input, shape index: {}]   ;;  %s2370_s3 = inlined_call_operand.vmem [shape: bf16[32,64], index: 3, kind: input, shape index: {}]   ;;  %s2371_s4 = inlined_call_operand.vmem [shape: f32[1,64], index: 4, kind: input, shape index: {}]   ;;  %s2372_s5 = inlined_call_operand.vmem [shape: bf16[32,128], index: 5, kind: input, shape index: {}]   ;;  %s2373_s6 = inlined_call_operand.vmem [shape: f32[1,128], index: 6, kind: input, shape index: {}]   ;;  %s2374_s7 = inlined_call_operand.vmem [shape: bf16[32,128], index: 7, kind: input, shape index: {}]   ;;  %s2375_s8 = inlined_call_operand.vmem [shape: f32[1,128], index: 8, kind: input, shape index: {}]   ;;  %s2376_s9 = inlined_call_operand.vmem [shape: bf16[128,3], index: 9, kind: input, shape index: {}]   ;;  %s2377_s10 = inlined_call_operand.vmem [shape: f32[1,3], index: 10, kind: input, shape index: {}]   ;;  %s2378_s11 = inlined_call_operand.vmem [shape: f32[128,128], index: 11, kind: output, shape index: {0}]   ;;  %s2379_s12 = inlined_call_operand.hbm [shape: f32[2,3], index: 12, kind: output, shape index: {1}]  }
   0x1   :  { %v1661_v0 = vld [vmem:[%s2368_s1 + $0x10] ss:$0 sps:$4 sm:$0x33]   ;;  %v1662_v1 = vld [vmem:[%s2368_s1 + $0x8] sm:$0xff]   ;;  %v1664_v3 = vld [vmem:[%s2367_s0] sm:$0xff]  }
   0x2   :  { %1656 = vmatprep.subr.msk.bf16.mxu0 %vm143_vm0, %v1661_v0  ;;  %v145_v2 = vsel %vm143_vm0, %v1661_v0, 0  ;;  %v1663_v4 = vld [vmem:[%s2368_s1] sm:$0xff]   ;;  %1560 = vmatprep.mubr.msk.bf16.mxu0 %vm118_vm1, %v1664_v3  ;;  %v1665_v5 = vld [vmem:[%s2367_s0 + $0x8] sm:$0xff]   ;;  %v1666_v6 = vld [vmem:[%s2367_s0 + $0x10] sm:$0xff]  }
   0x3   :  { %1555 = vmatpush3.bf16.msra.mxu0 %v145_v2  ;;  %v1667_v7 = vld [vmem:[%s2367_s0 + $0x18] sm:$0xff]   ;;  %v1668_v8 = vld [vmem:[%s2367_s0 + $0x20] sm:$0xff]  }
   0x4   :  { %1556 = vmatprep.subr.bf16.mxu0 %v1662_v1 }
   0x7   :  { %1557 = vmatpush3.bf16.msra.mxu0 %v1662_v1 }
   0x8   :  { %1558 = vmatprep.subr.bf16.mxu0 %v1663_v4 }
   0xb   :  { %1559 = vmatpush3.bf16.msra.mxu0 %v1663_v4 }
   0xe   :  { %1561 = vmatmul.mubr.msk.bf16.vlgmr.msra.gmra.mxu0 %vm118_vm1, %v1665_v5 }
   0xf   :  { %1564 = vmatprep.mubr.msk.bf16.mxu0 %vm118_vm1, %v1666_v6 }
  0x10   :  { %18 = vsyncpa [#allocation3], 0  ;;  %v1669_v9 = vld [vmem:[%s2367_s0 + $0x28] sm:$0xff]   ;;  %v1670_v10 = vld [vmem:[%s2367_s0 + $0x30] sm:$0xff]   ;;  %vm244_vm2 = vcmask 261120   ;;  %vm544_vm3 = vcmask 523264  }
  0x11   :  { %v1671_v11 = vld [vmem:[%s2367_s0 + $0x38] sm:$0xff]   ;;  %v1672_v12 = vld [vmem:[%s2370_s3 + $0x8] sm:$0xff]   ;;  %v1673_v13 = vld [vmem:[%s2370_s3] sm:$0xff]   ;;  %vm1722_vm4 = vmmov 0   ;;  %vm1323_vm5 = vcmask 1041409   ;;  %vm1415_vm6 = vcmask 17408  }
  0x12   :  { %1576 = vmatprep.subr.bf16.mxu1 %v1672_v12 }
  0x13   :  { %1577 = vmatpush3.bf16.msra.mxu1 %v1672_v12 }
  0x14   :  { %1578 = vmatprep.subr.bf16.mxu1 %v1673_v13 }
  0x16   :  { %1565 = vmatmul.mubr.msk.bf16.gmra.mxu0 %vm118_vm1, %v1667_v7 }
  0x17   :  { %1568 = vmatprep.mubr.msk.bf16.mxu0 %vm118_vm1, %v1668_v8  ;;  %1579 = vmatpush3.bf16.msra.mxu1 %v1673_v13 }
  0x1e   :  { %1569 = vmatmul.mubr.msk.bf16.gmra.mxu0 %vm118_vm1, %v1669_v9 }
  0x1f   :  { %1572 = vmatprep.mubr.msk.bf16.mxu0 %vm118_vm1, %v1670_v10 }
  0x26   :  { %1573 = vmatmul.mubr.msk.bf16.gmra.mxu0 %vm118_vm1, %v1671_v11 }
  0xce   :  { %v1836_v14 = vpop.f32.mrf.mxu0 }
  0xcf   :  { %v285_v19 = vmul.f32 %v1836_v14, %v1836_v14  ;;  %v248_v25 = vsel %vm244_vm2, %v1836_v14, 0.0 }
  0xd0   :  { %v1838_v15 = vpop.f32.mrf.mxu0 }
  0xd1   :  { %v283_v17 = vmul.f32 %v1838_v15, %v1838_v15  ;;  %v245_v20 = vsel %vm244_vm2, %v1838_v15, 0.0  ;;  %v302_v32 = vsel %vm244_vm2, %v285_v19, 0.0 }
  0xd2   :  { %v1840_v16 = vpop.f32.mrf.mxu0 }
  0xd3   :  { %v299_v26 = vsel %vm244_vm2, %v283_v17, 0.0  ;;  %v286_v27 = vmul.f32 %v1840_v16, %v1840_v16  ;;  %v250_v33 = vsel %vm244_vm2, %v1840_v16, 0.0 }
  0xd4   :  { %v1844_v18 = vpop.f32.mrf.mxu0 }
  0xd5   :  { %v246_v21 = vsel %vm244_vm2, %v1844_v18, 0.0  ;;  %v284_v22 = vmul.f32 %v1844_v18, %v1844_v18  ;;  %v304_v38 = vsel %vm244_vm2, %v286_v27, 0.0 }
  0xd6   :  { %v247_v23 = vadd.f32 %v246_v21, %v245_v20  ;;  %v1854_v24 = vpop.f32.mrf.mxu0 }
  0xd7   :  { %v300_v28 = vsel %vm244_vm2, %v284_v22, 0.0  ;;  %v289_v43 = vmul.f32 %v1854_v24, %v1854_v24  ;;  %v256_v50 = vsel %vm244_vm2, %v1854_v24, 0.0 }
  0xd8   :  { %v249_v29 = vadd.f32 %v248_v25, %v247_v23  ;;  %v301_v30 = vadd.f32 %v300_v28, %v299_v26  ;;  %v1862_v31 = vpop.f32.mrf.mxu0 }
  0xd9   :  { %v287_v34 = vmul.f32 %v1862_v31, %v1862_v31  ;;  %v252_v39 = vsel %vm244_vm2, %v1862_v31, 0.0  ;;  %v310_v56 = vsel %vm244_vm2, %v289_v43, 0.0 }
  0xda   :  { %v303_v35 = vadd.f32 %v302_v32, %v301_v30  ;;  %v251_v36 = vadd.f32 %v250_v33, %v249_v29  ;;  %v1869_v37 = vpop.f32.mrf.mxu0 }
  0xdb   :  { %v306_v44 = vsel %vm244_vm2, %v287_v34, 0.0  ;;  %v290_v51 = vmul.f32 %v1869_v37, %v1869_v37  ;;  %v258_v57 = vsel %vm244_vm2, %v1869_v37, 0.0 }
  0xdc   :  { %v253_v40 = vadd.f32 %v252_v39, %v251_v36  ;;  %v305_v41 = vadd.f32 %v304_v38, %v303_v35  ;;  %v1874_v42 = vpop.f32.mrf.mxu0 }
  0xdd   :  { %v254_v45 = vsel %vm244_vm2, %v1874_v42, 0.0  ;;  %v288_v46 = vmul.f32 %v1874_v42, %v1874_v42  ;;  %v312_v62 = vsel %vm244_vm2, %v290_v51, 0.0 }
  0xde   :  { %v307_v47 = vadd.f32 %v306_v44, %v305_v41  ;;  %v255_v48 = vadd.f32 %v254_v45, %v253_v40  ;;  %v1883_v49 = vpop.f32.mrf.mxu0 }
  0xdf   :  { %v308_v52 = vsel %vm244_vm2, %v288_v46, 0.0  ;;  %v293_v3 = vmul.f32 %v1883_v49, %v1883_v49  ;;  %v264_v10 = vsel %vm244_vm2, %v1883_v49, 0.0 }
  0xe0   :  { %v257_v53 = vadd.f32 %v256_v50, %v255_v48  ;;  %v309_v54 = vadd.f32 %v308_v52, %v307_v47  ;;  %v1890_v55 = vpop.f32.mrf.mxu0 }
  0xe1   :  { %v291_v58 = vmul.f32 %v1890_v55, %v1890_v55  ;;  %v260_v63 = vsel %vm244_vm2, %v1890_v55, 0.0  ;;  %v318_v20 = vsel %vm244_vm2, %v293_v3, 0.0 }
  0xe2   :  { %v311_v59 = vadd.f32 %v310_v56, %v309_v54  ;;  %v259_v60 = vadd.f32 %v258_v57, %v257_v53  ;;  %v1897_v61 = vpop.f32.mrf.mxu0 }
  0xe3   :  { %v314_v4 = vsel %vm244_vm2, %v291_v58, 0.0  ;;  %v294_v11 = vmul.f32 %v1897_v61, %v1897_v61  ;;  %v266_v21 = vsel %vm244_vm2, %v1897_v61, 0.0 }
  0xe4   :  { %v261_v0 = vadd.f32 %v260_v63, %v259_v60  ;;  %v313_v1 = vadd.f32 %v312_v62, %v311_v59  ;;  %v1902_v2 = vpop.f32.mrf.mxu0 }
  0xe5   :  { %v262_v5 = vsel %vm244_vm2, %v1902_v2, 0.0  ;;  %v292_v6 = vmul.f32 %v1902_v2, %v1902_v2  ;;  %v320_v27 = vsel %vm244_vm2, %v294_v11, 0.0  ;;  %v362_v11 = vlaneseq }
  0xe6   :  { %v315_v7 = vadd.f32 %v314_v4, %v313_v1  ;;  %v263_v8 = vadd.f32 %v262_v5, %v261_v0  ;;  %v1911_v9 = vpop.f32.mrf.mxu0 }
  0xe7   :  { %v316_v12 = vsel %vm244_vm2, %v292_v6, 0.0  ;;  %v297_v33 = vmul.f32 %v1911_v9, %v1911_v9  ;;  %v272_v40 = vsel %vm244_vm2, %v1911_v9, 0.0 }
  0xe8   :  { %v265_v13 = vadd.f32 %v264_v10, %v263_v8  ;;  %v317_v17 = vadd.f32 %v316_v12, %v315_v7  ;;  %v1918_v19 = vpop.f32.mrf.mxu0  ;;  %v363_v12 = vshrl.u32 %v362_v11, 7 }
  0xe9   :  { %v295_v22 = vmul.f32 %v1918_v19, %v1918_v19  ;;  %v268_v28 = vsel %vm244_vm2, %v1918_v19, 0.0  ;;  %v326_v46 = vsel %vm244_vm2, %v297_v33, 0.0 }
  0xea   :  { %v319_v23 = vadd.f32 %v318_v20, %v317_v17  ;;  %v267_v25 = vadd.f32 %v266_v21, %v265_v13  ;;  %v1925_v26 = vpop.f32.mrf.mxu0  ;;  %v358_v17 = vld [vmem:[%s2369_s2] sm:$0x1]  ;;  %v1951_v21 = vsub.s32 0, %v363_v12 }
  0xeb   :  { %v322_v34 = vsel %vm244_vm2, %v295_v22, 0.0  ;;  %v298_v41 = vmul.f32 %v1925_v26, %v1925_v26  ;;  %v274_v47 = vsel %vm244_vm2, %v1925_v26, 0.0 }
  0xec   :  { %v269_v29 = vadd.f32 %v268_v28, %v267_v25  ;;  %v321_v30 = vadd.f32 %v320_v27, %v319_v23  ;;  %v1930_v32 = vpop.f32.mrf.mxu0 }
  0xed   :  { %v270_v35 = vsel %vm244_vm2, %v1930_v32, 0.0  ;;  %v296_v36 = vmul.f32 %v1930_v32, %v1930_v32  ;;  %v328_v51 = vsel %vm244_vm2, %v298_v41, 0.0 }
  0xee   :  { %v323_v38 = vadd.f32 %v322_v34, %v321_v30  ;;  %v271_v39 = vadd.f32 %v270_v35, %v269_v29 }
  0xef   :  { %v324_v43 = vsel %vm244_vm2, %v296_v36, 0.0 }
  0xf0   :  { %v273_v44 = vadd.f32 %v272_v40, %v271_v39  ;;  %v325_v45 = vadd.f32 %v324_v43, %v323_v38 }
  0xf2   :  { %v275_v48 = vadd.f32 %v274_v47, %v273_v44  ;;  %v327_v50 = vadd.f32 %v326_v46, %v325_v45 }
  0xf4   :  { %v276_v52 = vrot.slane %v275_v48, 4  ;;  %v329_v53 = vadd.f32 %v328_v51, %v327_v50 }
  0xf6   :  { %v277_v54 = vadd.f32 %v276_v52, %v275_v48  ;;  %v330_v56 = vrot.slane %v329_v53, 4 }
  0xf8   :  { %v278_v57 = vrot.slane %v277_v54, 2  ;;  %v331_v58 = vadd.f32 %v330_v56, %v329_v53 }
  0xfa   :  { %v279_v59 = vadd.f32 %v278_v57, %v277_v54  ;;  %v332_v60 = vrot.slane %v331_v58, 2 }
  0xfc   :  { %v280_v62 = vrot.slane %v279_v59, 1  ;;  %v333_v63 = vadd.f32 %v332_v60, %v331_v58 }
  0xfe   :  { %v281_v0 = vadd.f32 %v280_v62, %v279_v59  ;;  %v334_v1 = vrot.slane %v333_v63, 1 }
 0x100   :  { %v282_v3 = vmul.f32 0.0078125, %v281_v0  ;;  %v335_v4 = vadd.f32 %v334_v1, %v333_v63 }
 0x102   :  { %v336_v5 = vmul.f32 0.0078125, %v335_v4  ;;  %v337_v6 = vmul.f32 %v282_v3, %v282_v3 }
 0x104   :  { %v338_v7 = vsub.f32 %v336_v5, %v337_v6 }
 0x106   :  { %v339_v8 = vmax.f32 %v338_v7, 0.0 }
 0x108   :  { %v340_v10 = vadd.f32 1e-05, %v339_v8 }
 0x10a   :  { %1686 = vrsqrt.f32 %v340_v10 }
 0x117   :  { %v1687_v13 = vpop.eup %1686 }
 0x118   :  { %v359_v20 = vmul.f32 %v1687_v13, %v282_v3  ;;  %v342_v23 = vmul.f32 %v1687_v13, %v1838_v15  ;;  %v343_v25 = vmul.f32 %v1687_v13, %v1844_v18  ;;  %v344_v27 = vmul.f32 %v1687_v13, %v1836_v14 }
 0x119   :  { %v345_v29 = vmul.f32 %v1687_v13, %v1840_v16  ;;  %v346_v30 = vmul.f32 %v1687_v13, %v1862_v31  ;;  %v347_v33 = vmul.f32 %v1687_v13, %v1874_v42  ;;  %v348_v34 = vmul.f32 %v1687_v13, %v1854_v24 }
 0x11a   :  { %v360_v22 = vsub.f32 %v358_v17, %v359_v20  ;;  %v349_v35 = vmul.f32 %v1687_v13, %v1869_v37  ;;  %v350_v36 = vmul.f32 %v1687_v13, %v1890_v55  ;;  %v351_v15 = vmul.f32 %v1687_v13, %v1902_v2  ;;  %v1677_v17 = vld [vmem:[%s2374_s7] sm:$0xff]  }
 0x11b   :  { %v352_v14 = vmul.f32 %v1687_v13, %v1883_v49  ;;  %v353_v31 = vmul.f32 %v1687_v13, %v1897_v61  ;;  %v356_v24 = vmul.f32 %v1687_v13, %v1911_v9  ;;  %v357_v2 = vmul.f32 %v1687_v13, %v1925_v26 }
 0x11c   :  { %v365_v28 = vrot.slane %v360_v22, %v1951_v21  ;;  %v355_v4 = vmul.f32 %v1687_v13, %v1930_v32  ;;  %v354_v5 = vmul.f32 %v1687_v13, %v1918_v19  ;;  %v1674_v19 = vld [vmem:[%s2372_s5 + $0x8] sm:$0xff]   ;;  %v1675_v32 = vld [vmem:[%s2372_s5] sm:$0xff]  }
 0x11d   :  { %1596 = vmatprep.subr.bf16.mxu1 %v1674_v19  ;;  %v1676_v13 = vld [vmem:[%s2374_s7 + $0x8] sm:$0xff]  }
 0x11e   :  { %v367_v38 = vadd.f32 %v365_v28, %v342_v23  ;;  %v368_v18 = vadd.f32 %v365_v28, %v343_v25  ;;  %v369_v39 = vadd.f32 %v365_v28, %v344_v27  ;;  %v370_v40 = vadd.f32 %v365_v28, %v345_v29  ;;  %1616 = vmatprep.subr.bf16.mxu0 %v1676_v13 }
 0x11f   :  { %v371_v41 = vadd.f32 %v365_v28, %v346_v30  ;;  %v372_v16 = vadd.f32 %v365_v28, %v347_v33  ;;  %v373_v47 = vadd.f32 %v365_v28, %v348_v34  ;;  %v375_v48 = vadd.f32 %v365_v28, %v350_v36  ;;  %1617 = vmatpush3.bf16.msra.mxu0 %v1676_v13 }
 0x120   :  { %v383_v43 = vmax.f32 %v367_v38, 0.0  ;;  %v384_v42 = vmax.f32 %v368_v18, 0.0  ;;  %v385_v44 = vmax.f32 %v369_v39, 0.0  ;;  %v386_v37 = vmax.f32 %v370_v40, 0.0  ;;  %1618 = vmatprep.subr.bf16.mxu0 %v1677_v17 }
 0x121   :  { %v387_v45 = vmax.f32 %v371_v41, 0.0  ;;  %v388_v55 = vmax.f32 %v372_v16, 0.0  ;;  %v376_v50 = vadd.f32 %v365_v28, %v351_v15  ;;  %v374_v52 = vadd.f32 %v365_v28, %v349_v35 }
 0x122   :  { %v399_v46 = vpack.c.bf16 %v384_v42, %v383_v43  ;;  %v400_v49 = vpack.c.bf16 %v386_v37, %v385_v44  ;;  %v377_v53 = vadd.f32 %v365_v28, %v352_v14  ;;  %v391_v61 = vmax.f32 %v375_v48, 0.0 }
 0x123   :  { %v401_v51 = vpack.c.bf16 %v388_v55, %v387_v45  ;;  %v392_v54 = vmax.f32 %v376_v50, 0.0  ;;  %v378_v56 = vadd.f32 %v365_v28, %v353_v31  ;;  %v381_v57 = vadd.f32 %v365_v28, %v356_v24  ;;  %1619 = vmatpush3.bf16.msra.mxu0 %v1677_v17 }
 0x124   :  { %1580 = vmatprep.mubr.msk.bf16.mxu1 %vm244_vm2, %v399_v46  ;;  %v393_v9 = vmax.f32 %v377_v53, 0.0  ;;  %v382_v58 = vadd.f32 %v365_v28, %v357_v2  ;;  %v389_v60 = vmax.f32 %v373_v47, 0.0  ;;  %v390_v62 = vmax.f32 %v374_v52, 0.0 }
 0x125   :  { %1581 = vmatmul.mubr.msk.bf16.vlgmr.msra.gmra.mxu1 %vm244_vm2, %v400_v49  ;;  %v403_v26 = vpack.c.bf16 %v392_v54, %v391_v61  ;;  %v394_v59 = vmax.f32 %v378_v56, 0.0  ;;  %v397_v63 = vmax.f32 %v381_v57, 0.0  ;;  %v380_v7 = vadd.f32 %v365_v28, %v355_v4 }
 0x126   :  { %1584 = vmatprep.mubr.msk.bf16.mxu1 %vm244_vm2, %v401_v51  ;;  %v398_v0 = vmax.f32 %v382_v58, 0.0  ;;  %v402_v6 = vpack.c.bf16 %v390_v62, %v389_v60  ;;  %v379_v8 = vadd.f32 %v365_v28, %v354_v5  ;;  %1597 = vmatpush3.bf16.msra.mxu1 %v1674_v19 }
 0x127   :  { %v404_v1 = vpack.c.bf16 %v394_v59, %v393_v9  ;;  %v396_v10 = vmax.f32 %v380_v7, 0.0  ;;  %1598 = vmatprep.subr.bf16.mxu1 %v1675_v32 }
 0x128   :  { %v406_v3 = vpack.c.bf16 %v398_v0, %v397_v63  ;;  %v395_v11 = vmax.f32 %v379_v8, 0.0 }
 0x12a   :  { %v405_v12 = vpack.c.bf16 %v396_v10, %v395_v11  ;;  %1599 = vmatpush3.bf16.msra.mxu1 %v1675_v32 }
 0x12d   :  { %1585 = vmatmul.mubr.msk.bf16.gmra.mxu1 %vm244_vm2, %v402_v6 }
 0x12e   :  { %1588 = vmatprep.mubr.msk.bf16.mxu1 %vm244_vm2, %v403_v26 }
 0x135   :  { %1589 = vmatmul.mubr.msk.bf16.gmra.mxu1 %vm244_vm2, %v404_v1 }
 0x136   :  { %1592 = vmatprep.mubr.msk.bf16.mxu1 %vm244_vm2, %v405_v12 }
 0x13d   :  { %1593 = vmatmul.mubr.msk.bf16.gmra.mxu1 %vm244_vm2, %v406_v3 }
 0x1e5   :  { %v1990_v20 = vpop.f32.mrf.mxu1 }
 0x1e6   :  { %v585_v28 = vmul.f32 %v1990_v20, %v1990_v20  ;;  %v548_v36 = vsel %vm544_vm3, %v1990_v20, 0.0 }
 0x1e7   :  { %v1992_v22 = vpop.f32.mrf.mxu1 }
 0x1e8   :  { %v583_v25 = vmul.f32 %v1992_v22, %v1992_v22  ;;  %v545_v29 = vsel %vm544_vm3, %v1992_v22, 0.0  ;;  %v602_v41 = vsel %vm544_vm3, %v585_v28, 0.0 }
 0x1e9   :  { %v1994_v23 = vpop.f32.mrf.mxu1 }
 0x1ea   :  { %v599_v15 = vsel %vm544_vm3, %v583_v25, 0.0  ;;  %v586_v38 = vmul.f32 %v1994_v23, %v1994_v23  ;;  %v550_v16 = vsel %vm544_vm3, %v1994_v23, 0.0 }
 0x1eb   :  { %v1998_v27 = vpop.f32.mrf.mxu1 }
 0x1ec   :  { %v546_v30 = vsel %vm544_vm3, %v1998_v27, 0.0  ;;  %v584_v33 = vmul.f32 %v1998_v27, %v1998_v27  ;;  %v604_v24 = vsel %vm544_vm3, %v586_v38, 0.0 }
 0x1ed   :  { %v547_v34 = vadd.f32 %v546_v30, %v545_v29  ;;  %v2008_v35 = vpop.f32.mrf.mxu1 }
 0x1ee   :  { %v600_v18 = vsel %vm544_vm3, %v584_v33, 0.0  ;;  %v589_v46 = vmul.f32 %v2008_v35, %v2008_v35  ;;  %v556_v53 = vsel %vm544_vm3, %v2008_v35, 0.0 }
 0x1ef   :  { %v549_v39 = vadd.f32 %v548_v36, %v547_v34  ;;  %v601_v14 = vadd.f32 %v600_v18, %v599_v15  ;;  %v2016_v40 = vpop.f32.mrf.mxu1 }
 0x1f0   :  { %v587_v31 = vmul.f32 %v2016_v40, %v2016_v40  ;;  %v552_v37 = vsel %vm544_vm3, %v2016_v40, 0.0  ;;  %v610_v58 = vsel %vm544_vm3, %v589_v46, 0.0 }
 0x1f1   :  { %v603_v43 = vadd.f32 %v602_v41, %v601_v14  ;;  %v551_v42 = vadd.f32 %v550_v16, %v549_v39  ;;  %v2023_v44 = vpop.f32.mrf.mxu1 }
 0x1f2   :  { %v606_v47 = vsel %vm544_vm3, %v587_v31, 0.0  ;;  %v590_v61 = vmul.f32 %v2023_v44, %v2023_v44  ;;  %v558_v26 = vsel %vm544_vm3, %v2023_v44, 0.0 }
 0x1f3   :  { %v553_v45 = vadd.f32 %v552_v37, %v551_v42  ;;  %v605_v55 = vadd.f32 %v604_v24, %v603_v43  ;;  %v2028_v2 = vpop.f32.mrf.mxu1 }
 0x1f4   :  { %v554_v48 = vsel %vm544_vm3, %v2028_v2, 0.0  ;;  %v588_v50 = vmul.f32 %v2028_v2, %v2028_v2  ;;  %v612_v0 = vsel %vm544_vm3, %v590_v61, 0.0 }
 0x1f5   :  { %v607_v49 = vadd.f32 %v606_v47, %v605_v55  ;;  %v555_v51 = vadd.f32 %v554_v48, %v553_v45  ;;  %v2037_v52 = vpop.f32.mrf.mxu1 }
 0x1f6   :  { %v608_v54 = vsel %vm544_vm3, %v588_v50, 0.0  ;;  %v593_v6 = vmul.f32 %v2037_v52, %v2037_v52  ;;  %v564_v32 = vsel %vm544_vm3, %v2037_v52, 0.0 }
 0x1f7   :  { %v557_v56 = vadd.f32 %v556_v53, %v555_v51  ;;  %v609_v9 = vadd.f32 %v608_v54, %v607_v49  ;;  %v2044_v57 = vpop.f32.mrf.mxu1 }
 0x1f8   :  { %v591_v59 = vmul.f32 %v2044_v57, %v2044_v57  ;;  %v560_v1 = vsel %vm544_vm3, %v2044_v57, 0.0  ;;  %v618_v30 = vsel %vm544_vm3, %v593_v6, 0.0 }
 0x1f9   :  { %v611_v60 = vadd.f32 %v610_v58, %v609_v9  ;;  %v559_v62 = vadd.f32 %v558_v26, %v557_v56  ;;  %v2051_v63 = vpop.f32.mrf.mxu1 }
 0x1fa   :  { %v614_v7 = vsel %vm544_vm3, %v591_v59, 0.0  ;;  %v594_v13 = vmul.f32 %v2051_v63, %v2051_v63  ;;  %v566_v33 = vsel %vm544_vm3, %v2051_v63, 0.0 }
 0x1fb   :  { %v561_v3 = vadd.f32 %v560_v1, %v559_v62  ;;  %v613_v4 = vadd.f32 %v612_v0, %v611_v60  ;;  %v2056_v5 = vpop.f32.mrf.mxu1 }
 0x1fc   :  { %v562_v8 = vsel %vm544_vm3, %v2056_v5, 0.0  ;;  %v592_v10 = vmul.f32 %v2056_v5, %v2056_v5  ;;  %v620_v18 = vsel %vm544_vm3, %v594_v13, 0.0 }
 0x1fd   :  { %v615_v11 = vadd.f32 %v614_v7, %v613_v4  ;;  %v563_v12 = vadd.f32 %v562_v8, %v561_v3  ;;  %v2065_v19 = vpop.f32.mrf.mxu1 }
 0x1fe   :  { %v616_v17 = vsel %vm544_vm3, %v592_v10, 0.0  ;;  %v597_v31 = vmul.f32 %v2065_v19, %v2065_v19  ;;  %v572_v55 = vsel %vm544_vm3, %v2065_v19, 0.0 }
 0x1ff   :  { %v565_v25 = vadd.f32 %v564_v32, %v563_v12  ;;  %v617_v28 = vadd.f32 %v616_v17, %v615_v11  ;;  %v2072_v29 = vpop.f32.mrf.mxu1 }
 0x200   :  { %v595_v34 = vmul.f32 %v2072_v29, %v2072_v29  ;;  %v568_v39 = vsel %vm544_vm3, %v2072_v29, 0.0  ;;  %v626_v49 = vsel %vm544_vm3, %v597_v31, 0.0 }
 0x201   :  { %v619_v36 = vadd.f32 %v618_v30, %v617_v28  ;;  %v567_v15 = vadd.f32 %v566_v33, %v565_v25  ;;  %v2079_v38 = vpop.f32.mrf.mxu1  ;;  %v658_v25 = vld [vmem:[%s2371_s4] sm:$0x1]  ;;  %s1720_s4 = smov 96  }
 0x202   :  { %v622_v43 = vsel %vm544_vm3, %v595_v34, 0.0  ;;  %v598_v46 = vmul.f32 %v2079_v38, %v2079_v38  ;;  %v574_v51 = vsel %vm544_vm3, %v2079_v38, 0.0 }
 0x203   :  { %v569_v14 = vadd.f32 %v568_v39, %v567_v15  ;;  %v621_v41 = vadd.f32 %v620_v18, %v619_v36  ;;  %v2084_v16 = vpop.f32.mrf.mxu1 }
 0x204   :  { %v570_v42 = vsel %vm544_vm3, %v2084_v16, 0.0  ;;  %v596_v24 = vmul.f32 %v2084_v16, %v2084_v16  ;;  %v628_v54 = vsel %vm544_vm3, %v598_v46, 0.0 }
 0x205   :  { %v623_v37 = vadd.f32 %v622_v43, %v621_v41  ;;  %v571_v45 = vadd.f32 %v570_v42, %v569_v14 }
 0x206   :  { %v624_v47 = vsel %vm544_vm3, %v596_v24, 0.0 }
 0x207   :  { %v573_v48 = vadd.f32 %v572_v55, %v571_v45  ;;  %v625_v50 = vadd.f32 %v624_v47, %v623_v37 }
 0x209   :  { %v575_v53 = vadd.f32 %v574_v51, %v573_v48  ;;  %v627_v61 = vadd.f32 %v626_v49, %v625_v50 }
 0x20b   :  { %v576_v56 = vrot.slane %v575_v53, 4  ;;  %v629_v9 = vadd.f32 %v628_v54, %v627_v61 }
 0x20d   :  { %v577_v58 = vadd.f32 %v576_v56, %v575_v53  ;;  %v630_v26 = vrot.slane %v629_v9, 4 }
 0x20f   :  { %v578_v59 = vrot.slane %v577_v58, 2  ;;  %v631_v60 = vadd.f32 %v630_v26, %v629_v9 }
 0x211   :  { %v579_v62 = vadd.f32 %v578_v59, %v577_v58  ;;  %v632_v0 = vrot.slane %v631_v60, 2 }
 0x213   :  { %v580_v1 = vrot.slane %v579_v62, 1  ;;  %v633_v3 = vadd.f32 %v632_v0, %v631_v60 }
 0x215   :  { %v581_v4 = vadd.f32 %v580_v1, %v579_v62  ;;  %v634_v6 = vrot.slane %v633_v3, 1 }
 0x217   :  { %v582_v7 = vmul.f32 0.0078125, %v581_v4  ;;  %v635_v8 = vadd.f32 %v634_v6, %v633_v3 }
 0x219   :  { %v636_v10 = vmul.f32 0.0078125, %v635_v8  ;;  %v637_v11 = vmul.f32 %v582_v7, %v582_v7 }
 0x21b   :  { %v638_v12 = vsub.f32 %v636_v10, %v637_v11 }
 0x21d   :  { %v639_v32 = vmax.f32 %v638_v12, 0.0 }
 0x21f   :  { %v640_v13 = vadd.f32 1e-05, %v639_v32 }
 0x221   :  { %1688 = vrsqrt.f32 %v640_v13 }
 0x22e   :  { %v1689_v17 = vpop.eup %1688 }
 0x22f   :  { %v659_v28 = vmul.f32 %v1689_v17, %v582_v7  ;;  %v646_v33 = vmul.f32 %v1689_v17, %v2016_v40  ;;  %v647_v34 = vmul.f32 %v1689_v17, %v2028_v2  ;;  %v642_v36 = vmul.f32 %v1689_v17, %v1992_v22 }
 0x230   :  { %v643_v15 = vmul.f32 %v1689_v17, %v1998_v27  ;;  %v644_v39 = vmul.f32 %v1689_v17, %v1990_v20  ;;  %v645_v14 = vmul.f32 %v1689_v17, %v1994_v23  ;;  %v648_v41 = vmul.f32 %v1689_v17, %v2008_v35 }
 0x231   :  { %v660_v30 = vsub.f32 %v658_v25, %v659_v28  ;;  %v649_v31 = vmul.f32 %v1689_v17, %v2023_v44  ;;  %v652_v43 = vmul.f32 %v1689_v17, %v2037_v52  ;;  %v653_v40 = vmul.f32 %v1689_v17, %v2051_v63 }
 0x232   :  { %v650_v2 = vmul.f32 %v1689_v17, %v2044_v57  ;;  %v651_v27 = vmul.f32 %v1689_v17, %v2056_v5  ;;  %v656_v58 = vmul.f32 %v1689_v17, %v2065_v19  ;;  %v657_v26 = vmul.f32 %v1689_v17, %v2079_v38 }
 0x233   :  { %v665_v18 = vrot.slane %v660_v30, %v1951_v21  ;;  %v655_v59 = vmul.f32 %v1689_v17, %v2084_v16  ;;  %v654_v0 = vmul.f32 %v1689_v17, %v2072_v29 }
 0x235   :  { %v671_v42 = vadd.f32 %v665_v18, %v646_v33  ;;  %v672_v22 = vadd.f32 %v665_v18, %v647_v34  ;;  %v667_v24 = vadd.f32 %v665_v18, %v642_v36  ;;  %v668_v37 = vadd.f32 %v665_v18, %v643_v15 }
 0x236   :  { %v669_v45 = vadd.f32 %v665_v18, %v644_v39  ;;  %v670_v20 = vadd.f32 %v665_v18, %v645_v14  ;;  %v673_v55 = vadd.f32 %v665_v18, %v648_v41  ;;  %v674_v47 = vadd.f32 %v665_v18, %v649_v31 }
 0x237   :  { %v687_v23 = vmax.f32 %v671_v42, 0.0  ;;  %v688_v46 = vmax.f32 %v672_v22, 0.0  ;;  %v683_v35 = vmax.f32 %v667_v24, 0.0  ;;  %v684_v44 = vmax.f32 %v668_v37, 0.0 }
 0x238   :  { %v685_v48 = vmax.f32 %v669_v45, 0.0  ;;  %v686_v52 = vmax.f32 %v670_v20, 0.0  ;;  %v689_v50 = vmax.f32 %v673_v55, 0.0  ;;  %v690_v49 = vmax.f32 %v674_v47, 0.0 }
 0x239   :  { %v701_v63 = vpack.c.bf16 %v688_v46, %v687_v23  ;;  %v677_v57 = vadd.f32 %v665_v18, %v652_v43  ;;  %v678_v51 = vadd.f32 %v665_v18, %v653_v40  ;;  %v699_v53 = vpack.c.bf16 %v684_v44, %v683_v35 }
 0x23a   :  { %v700_v61 = vpack.c.bf16 %v686_v52, %v685_v48  ;;  %v675_v54 = vadd.f32 %v665_v18, %v650_v2  ;;  %v676_v5 = vadd.f32 %v665_v18, %v651_v27  ;;  %v702_v1 = vpack.c.bf16 %v690_v49, %v689_v50 }
 0x23b   :  { %998 = vrot.lane.b32.xlu1 %v701_v63, %s1720_s4  ;;  %v693_v56 = vmax.f32 %v677_v57, 0.0  ;;  %v694_v9 = vmax.f32 %v678_v51, 0.0  ;;  %994 = vrot.lane.b32.xlu0 %v699_v53, %s1720_s4  ;;  %v681_v4 = vadd.f32 %v665_v18, %v656_v58  ;;  %v682_v6 = vadd.f32 %v665_v18, %v657_v26 }
 0x23c   :  { %1600 = vmatprep.mubr.msk.bf16.mxu1 %vm244_vm2, %v699_v53  ;;  %v691_v60 = vmax.f32 %v675_v54, 0.0  ;;  %v692_v62 = vmax.f32 %v676_v5, 0.0  ;;  %v680_v7 = vadd.f32 %v665_v18, %v655_v59  ;;  %v679_v38 = vadd.f32 %v665_v18, %v654_v0 }
 0x23d   :  { %1601 = vmatmul.mubr.msk.bf16.vlgmr.msra.gmra.mxu1 %vm244_vm2, %v700_v61  ;;  %v704_v3 = vpack.c.bf16 %v694_v9, %v693_v56  ;;  %v697_v16 = vmax.f32 %v681_v4, 0.0  ;;  %v698_v8 = vmax.f32 %v682_v6, 0.0 }
 0x23e   :  { %1604 = vmatprep.mubr.msk.bf16.mxu1 %vm244_vm2, %v701_v63  ;;  %v703_v19 = vpack.c.bf16 %v692_v62, %v691_v60  ;;  %v695_v10 = vmax.f32 %v679_v38, 0.0  ;;  %v696_v11 = vmax.f32 %v680_v7, 0.0 }
 0x23f   :  { %1000 = vrot.lane.b32.xlu1 %v702_v1, %s1720_s4  ;;  %996 = vrot.lane.b32.xlu0 %v700_v61, %s1720_s4  ;;  %v706_v29 = vpack.c.bf16 %v698_v8, %v697_v16 }
 0x240   :  { %v705_v12 = vpack.c.bf16 %v696_v11, %v695_v10 }
 0x243   :  { %1004 = vrot.lane.b32.xlu1 %v704_v3, %s1720_s4  ;;  %1002 = vrot.lane.b32.xlu0 %v703_v19, %s1720_s4 }
 0x245   :  { %1605 = vmatmul.mubr.msk.bf16.gmra.mxu1 %vm244_vm2, %v702_v1 }
 0x246   :  { %1608 = vmatprep.mubr.msk.bf16.mxu1 %vm244_vm2, %v703_v19 }
 0x247   :  { %1008 = vrot.lane.b32.xlu1 %v706_v29, %s1720_s4  ;;  %1006 = vrot.lane.b32.xlu0 %v705_v12, %s1720_s4 }
 0x24d   :  { %1609 = vmatmul.mubr.msk.bf16.gmra.mxu1 %vm244_vm2, %v704_v3 }
 0x24e   :  { %1612 = vmatprep.mubr.msk.bf16.mxu1 %vm244_vm2, %v705_v12 }
 0x255   :  { %1613 = vmatmul.mubr.msk.bf16.gmra.mxu1 %vm244_vm2, %v706_v29 }
 0x2ad   :  { %v995_v32 = vpop.permute.xlu0 %994  ;;  %v999_v17 = vpop.permute.xlu1 %998 }
 0x2ae   :  { %1620 = vmatprep.mubr.msk.bf16.mxu0 %vm244_vm2, %v995_v32 }
 0x2b1   :  { %v997_v13 = vpop.permute.xlu0 %996  ;;  %v1001_v25 = vpop.permute.xlu1 %1000 }
 0x2b2   :  { %1621 = vmatmul.mubr.msk.bf16.vlgmr.msra.gmra.mxu0 %vm244_vm2, %v997_v13 }
 0x2b3   :  { %1624 = vmatprep.mubr.msk.bf16.mxu0 %vm244_vm2, %v999_v17 }
 0x2b5   :  { %v1003_v28 = vpop.permute.xlu0 %1002  ;;  %v1005_v30 = vpop.permute.xlu1 %1004 }
 0x2b9   :  { %v1007_v33 = vpop.permute.xlu0 %1006  ;;  %v1009_v34 = vpop.permute.xlu1 %1008 }
 0x2ba   :  { %1625 = vmatmul.mubr.msk.bf16.gmra.mxu0 %vm244_vm2, %v1001_v25 }
 0x2bb   :  { %1628 = vmatprep.mubr.msk.bf16.mxu0 %vm244_vm2, %v1003_v28 }
 0x2c2   :  { %1629 = vmatmul.mubr.msk.bf16.gmra.mxu0 %vm244_vm2, %v1005_v30 }
 0x2c3   :  { %1632 = vmatprep.mubr.msk.bf16.mxu0 %vm244_vm2, %v1007_v33 }
 0x2ca   :  { %1633 = vmatmul.mubr.msk.bf16.gmra.mxu0 %vm244_vm2, %v1009_v34 }
 0x2fd   :  { %v2146_v36 = vpop.f32.mrf.mxu1 }
 0x2fe   :  { %v868_v40 = vmul.f32 %v2146_v36, %v2146_v36 }
 0x2ff   :  { %v2148_v15 = vpop.f32.mrf.mxu1 }
 0x300   :  { %v866_v14 = vmul.f32 %v2148_v15, %v2148_v15 }
 0x301   :  { %v2150_v18 = vpop.f32.mrf.mxu1 }
 0x302   :  { %v869_v24 = vmul.f32 %v2150_v18, %v2150_v18 }
 0x303   :  { %v2152_v39 = vpop.f32.mrf.mxu1 }
 0x304   :  { %v844_v41 = vadd.f32 %v2152_v39, %v2148_v15  ;;  %v867_v31 = vmul.f32 %v2152_v39, %v2152_v39 }
 0x305   :  { %v2160_v43 = vpop.f32.mrf.mxu1 }
 0x306   :  { %v845_v2 = vadd.f32 %v2146_v36, %v844_v41  ;;  %v882_v42 = vadd.f32 %v867_v31, %v866_v14  ;;  %v872_v52 = vmul.f32 %v2160_v43, %v2160_v43 }
 0x307   :  { %v2165_v22 = vpop.f32.mrf.mxu1 }
 0x308   :  { %v883_v27 = vadd.f32 %v882_v42, %v868_v40  ;;  %v846_v37 = vadd.f32 %v2150_v18, %v845_v2  ;;  %v870_v55 = vmul.f32 %v2165_v22, %v2165_v22 }
 0x309   :  { %v2170_v45 = vpop.f32.mrf.mxu1 }
 0x30a   :  { %v847_v20 = vadd.f32 %v846_v37, %v2165_v22  ;;  %v884_v23 = vadd.f32 %v883_v27, %v869_v24  ;;  %v873_v57 = vmul.f32 %v2170_v45, %v2170_v45 }
 0x30b   :  { %v2175_v46 = vpop.f32.mrf.mxu1 }
 0x30c   :  { %v885_v35 = vadd.f32 %v884_v23, %v870_v55  ;;  %v848_v47 = vadd.f32 %v847_v20, %v2175_v46  ;;  %v871_v44 = vmul.f32 %v2175_v46, %v2175_v46 }
 0x30d   :  { %v2180_v48 = vpop.f32.mrf.mxu1 }
 0x30e   :  { %v849_v50 = vadd.f32 %v2160_v43, %v848_v47  ;;  %v886_v63 = vadd.f32 %v885_v35, %v871_v44  ;;  %v876_v62 = vmul.f32 %v2180_v48, %v2180_v48 }
 0x30f   :  { %v2185_v49 = vpop.f32.mrf.mxu1 }
 0x310   :  { %v887_v51 = vadd.f32 %v886_v63, %v872_v52  ;;  %v850_v53 = vadd.f32 %v2170_v45, %v849_v50  ;;  %v874_v5 = vmul.f32 %v2185_v49, %v2185_v49 }
 0x311   :  { %v2190_v61 = vpop.f32.mrf.mxu1 }
 0x312   :  { %v851_v54 = vadd.f32 %v850_v53, %v2185_v49  ;;  %v888_v56 = vadd.f32 %v887_v51, %v873_v57  ;;  %v877_v4 = vmul.f32 %v2190_v61, %v2190_v61  ;;  %v925_v57 = vld [vmem:[%s2373_s6] sm:$0x1] }
 0x313   :  { %v816_v9 = vpop.f32.mrf.mxu1 }
 0x314   :  { %v889_v58 = vadd.f32 %v888_v56, %v874_v5  ;;  %v852_v26 = vadd.f32 %v851_v54, %v816_v9  ;;  %v875_v59 = vmul.f32 %v816_v9, %v816_v9 }
 0x315   :  { %v1614_v60 = vpop.f32.mrf.mxu1 }
 0x316   :  { %v853_v0 = vadd.f32 %v2180_v48, %v852_v26  ;;  %v890_v1 = vadd.f32 %v889_v58, %v875_v59  ;;  %v880_v32 = vmul.f32 %v1614_v60, %v1614_v60 }
 0x317   :  { %v829_v3 = vpop.f32.mrf.mxu1 }
 0x318   :  { %v891_v6 = vadd.f32 %v890_v1, %v876_v62  ;;  %v854_v7 = vadd.f32 %v2190_v61, %v853_v0  ;;  %v878_v16 = vmul.f32 %v829_v3, %v829_v3 }
 0x319   :  { %v1615_v19 = vpop.f32.mrf.mxu1 }
 0x31a   :  { %v855_v38 = vadd.f32 %v854_v7, %v829_v3  ;;  %v892_v8 = vadd.f32 %v891_v6, %v877_v4  ;;  %v881_v25 = vmul.f32 %v1615_v19, %v1615_v19 }
 0x31b   :  { %v832_v10 = vpop.f32.mrf.mxu1 }
 0x31c   :  { %v893_v11 = vadd.f32 %v892_v8, %v878_v16  ;;  %v856_v29 = vadd.f32 %v855_v38, %v832_v10  ;;  %v879_v12 = vmul.f32 %v832_v10, %v832_v10 }
 0x31e   :  { %v857_v13 = vadd.f32 %v1614_v60, %v856_v29  ;;  %v894_v17 = vadd.f32 %v893_v11, %v879_v12 }
 0x320   :  { %v858_v28 = vadd.f32 %v1615_v19, %v857_v13  ;;  %v895_v30 = vadd.f32 %v894_v17, %v880_v32 }
 0x322   :  { %v859_v33 = vrot.slane %v858_v28, 4  ;;  %v896_v34 = vadd.f32 %v895_v30, %v881_v25 }
 0x324   :  { %v860_v14 = vadd.f32 %v859_v33, %v858_v28  ;;  %v897_v41 = vrot.slane %v896_v34, 4 }
 0x326   :  { %v861_v31 = vrot.slane %v860_v14, 2  ;;  %v898_v40 = vadd.f32 %v897_v41, %v896_v34 }
 0x328   :  { %v862_v2 = vadd.f32 %v861_v31, %v860_v14  ;;  %v899_v42 = vrot.slane %v898_v40, 2 }
 0x32a   :  { %v863_v24 = vrot.slane %v862_v2, 1  ;;  %v900_v27 = vadd.f32 %v899_v42, %v898_v40  ;;  %v1678_v40 = vld [vmem:[%s2376_s9 + $0x38] sm:$0xff]  }
 0x32c   :  { %v864_v37 = vadd.f32 %v863_v24, %v862_v2  ;;  %v901_v20 = vrot.slane %v900_v27, 1 }
 0x32e   :  { %v865_v55 = vmul.f32 0.0078125, %v864_v37  ;;  %v902_v23 = vadd.f32 %v901_v20, %v900_v27  ;;  %v1721_v37 = vmov 0.0   ;;  %v1679_v20 = vld [vmem:[%s2376_s9 + $0x30] sm:$0xff]  }
 0x32f   :  { %1636 = vmatprep.subr.bf16.mxu1 %v1721_v37  ;;  %1652 = vmatprep.mubr.msk.bf16.mxu1 %vm1722_vm4, %v1721_v37 }
 0x330   :  { %v903_v35 = vmul.f32 0.0078125, %v902_v23  ;;  %v904_v47 = vmul.f32 %v865_v55, %v865_v55  ;;  %1637 = vmatpush3.bf16.msra.mxu1 %v1678_v40  ;;  %v1681_v23 = vld [vmem:[%s2376_s9 + $0x20] sm:$0xff]  }
 0x331   :  { %1638 = vmatprep.subr.bf16.mxu1 %v1721_v37 }
 0x332   :  { %v905_v44 = vsub.f32 %v903_v35, %v904_v47  ;;  %v1682_v35 = vld [vmem:[%s2376_s9 + $0x18] sm:$0xff]   ;;  %v1683_v47 = vld [vmem:[%s2376_s9 + $0x10] sm:$0xff]  }
 0x334   :  { %v906_v52 = vmax.f32 %v905_v44, 0.0  ;;  %1639 = vmatpush3.bf16.msra.mxu1 %v1679_v20  ;;  %v1684_v44 = vld [vmem:[%s2376_s9 + $0x8] sm:$0xff]  }
 0x335   :  { %1640 = vmatprep.subr.bf16.mxu1 %v1721_v37 }
 0x336   :  { %v907_v50 = vadd.f32 1e-05, %v906_v52  ;;  %v1685_v52 = vld [vmem:[%s2376_s9] sm:$0xff]  }
 0x338   :  { %1690 = vrsqrt.f32 %v907_v50 }
 0x345   :  { %v1691_v63 = vpop.eup %1690 }
 0x346   :  { %v926_v51 = vmul.f32 %v1691_v63, %v865_v55  ;;  %v909_v53 = vmul.f32 %v1691_v63, %v2148_v15  ;;  %v910_v54 = vmul.f32 %v1691_v63, %v2152_v39  ;;  %v911_v5 = vmul.f32 %v1691_v63, %v2146_v36  ;;  %v1680_v55 = vld [vmem:[%s2376_s9 + $0x28] sm:$0xff]  }
 0x347   :  { %v912_v56 = vmul.f32 %v1691_v63, %v2150_v18  ;;  %v913_v58 = vmul.f32 %v1691_v63, %v2165_v22  ;;  %v914_v59 = vmul.f32 %v1691_v63, %v2175_v46  ;;  %v915_v62 = vmul.f32 %v1691_v63, %v2160_v43  ;;  %1641 = vmatpush3.bf16.msra.mxu1 %v1680_v55 }
 0x348   :  { %v927_v26 = vsub.f32 %v925_v57, %v926_v51  ;;  %v916_v0 = vmul.f32 %v1691_v63, %v2170_v45  ;;  %v917_v1 = vmul.f32 %v1691_v63, %v2185_v49  ;;  %v918_v4 = vmul.f32 %v1691_v63, %v816_v9  ;;  %1642 = vmatprep.subr.bf16.mxu1 %v1721_v37 }
 0x349   :  { %v919_v15 = vmul.f32 %v1691_v63, %v2180_v48  ;;  %v920_v39 = vmul.f32 %v1691_v63, %v2190_v61  ;;  %v921_v6 = vmul.f32 %v1691_v63, %v829_v3  ;;  %v922_v18 = vmul.f32 %v1691_v63, %v832_v10 }
 0x34a   :  { %v932_v36 = vrot.slane %v927_v26, %v1951_v21  ;;  %v923_v7 = vmul.f32 %v1691_v63, %v1614_v60  ;;  %v924_v22 = vmul.f32 %v1691_v63, %v1615_v19 }
 0x34b   :  { %1643 = vmatpush3.bf16.msra.mxu1 %v1681_v23 }
 0x34c   :  { %v934_v38 = vadd.f32 %v932_v36, %v909_v53  ;;  %v935_v16 = vadd.f32 %v932_v36, %v910_v54  ;;  %v936_v46 = vadd.f32 %v932_v36, %v911_v5  ;;  %v937_v8 = vadd.f32 %v932_v36, %v912_v56  ;;  %1644 = vmatprep.subr.bf16.mxu1 %v1721_v37 }
 0x34d   :  { %v938_v43 = vadd.f32 %v932_v36, %v913_v58  ;;  %v939_v11 = vadd.f32 %v932_v36, %v914_v59  ;;  %v940_v45 = vadd.f32 %v932_v36, %v915_v62  ;;  %v941_v29 = vadd.f32 %v932_v36, %v916_v0 }
 0x34e   :  { %v942_v49 = vadd.f32 %v932_v36, %v917_v1  ;;  %v943_v9 = vadd.f32 %v932_v36, %v918_v4  ;;  %v944_v12 = vadd.f32 %v932_v36, %v919_v15  ;;  %v945_v48 = vadd.f32 %v932_v36, %v920_v39 }
 0x34f   :  { %v946_v32 = vadd.f32 %v932_v36, %v921_v6  ;;  %v947_v61 = vadd.f32 %v932_v36, %v922_v18  ;;  %v948_v13 = vadd.f32 %v932_v36, %v923_v7  ;;  %v949_v17 = vadd.f32 %v932_v36, %v924_v22  ;;  %1645 = vmatpush3.bf16.msra.mxu1 %v1682_v35 }
 0x350   :  { %v950_v3 = vmax.f32 %v934_v38, 0.0  ;;  %v951_v10 = vmax.f32 %v935_v16, 0.0  ;;  %v952_v60 = vmax.f32 %v936_v46, 0.0  ;;  %v953_v19 = vmax.f32 %v937_v8, 0.0  ;;  %1646 = vmatprep.subr.bf16.mxu1 %v1721_v37 }
 0x351   :  { %v954_v25 = vmax.f32 %v938_v43, 0.0  ;;  %v955_v28 = vmax.f32 %v939_v11, 0.0  ;;  %v956_v30 = vmax.f32 %v940_v45, 0.0  ;;  %v957_v33 = vmax.f32 %v941_v29, 0.0 }
 0x352   :  { %v958_v34 = vmax.f32 %v942_v49, 0.0  ;;  %v959_v14 = vmax.f32 %v943_v9, 0.0  ;;  %v960_v41 = vmax.f32 %v944_v12, 0.0  ;;  %v961_v31 = vmax.f32 %v945_v48, 0.0  ;;  %966 = vst [vmem:[%s2378_s11] sm:$0xff] %v950_v3  ;;  %967 = vst [vmem:[%s2378_s11 + $0x8] sm:$0xff] %v951_v10 }
 0x353   :  { %968 = vst [vmem:[%s2378_s11 + $0x10] sm:$0xff] %v952_v60  ;;  %969 = vst [vmem:[%s2378_s11 + $0x18] sm:$0xff] %v953_v19  ;;  %v962_v2 = vmax.f32 %v946_v32, 0.0  ;;  %v963_v42 = vmax.f32 %v947_v61, 0.0  ;;  %v964_v24 = vmax.f32 %v948_v13, 0.0  ;;  %v965_v27 = vmax.f32 %v949_v17, 0.0  ;;  %1647 = vmatpush3.bf16.msra.mxu1 %v1683_v47 }
 0x354   :  { %970 = vst [vmem:[%s2378_s11 + $0x20] sm:$0xff] %v954_v25  ;;  %971 = vst [vmem:[%s2378_s11 + $0x28] sm:$0xff] %v955_v28  ;;  %1648 = vmatprep.subr.bf16.mxu1 %v1721_v37 }
 0x355   :  { %972 = vst [vmem:[%s2378_s11 + $0x30] sm:$0xff] %v956_v30  ;;  %973 = vst [vmem:[%s2378_s11 + $0x38] sm:$0xff] %v957_v33 }
 0x356   :  { %974 = vst [vmem:[%s2378_s11 + $0x40] sm:$0xff] %v958_v34  ;;  %975 = vst [vmem:[%s2378_s11 + $0x48] sm:$0xff] %v959_v14 }
 0x357   :  { %976 = vst [vmem:[%s2378_s11 + $0x50] sm:$0xff] %v960_v41  ;;  %977 = vst [vmem:[%s2378_s11 + $0x58] sm:$0xff] %v961_v31  ;;  %1649 = vmatpush3.bf16.msra.mxu1 %v1684_v44 }
 0x358   :  { %978 = vst [vmem:[%s2378_s11 + $0x60] sm:$0xff] %v962_v2  ;;  %979 = vst [vmem:[%s2378_s11 + $0x68] sm:$0xff] %v963_v42  ;;  %1650 = vmatprep.subr.bf16.mxu1 %v1721_v37 }
 0x359   :  { %980 = vst [vmem:[%s2378_s11 + $0x70] sm:$0xff] %v964_v24  ;;  %981 = vst [vmem:[%s2378_s11 + $0x78] sm:$0xff] %v965_v27 }
 0x35b   :  { %1651 = vmatpush3.bf16.msra.mxu1 %v1685_v52 }
 0x372   :  { %v2288_v50 = vpop.f32.mrf.mxu0 }
 0x373   :  { %v1167_v58 = vmul.f32 %v2288_v50, %v2288_v50 }
 0x374   :  { %v2290_v63 = vpop.f32.mrf.mxu0 }
 0x375   :  { %v1165_v53 = vmul.f32 %v2290_v63, %v2290_v63 }
 0x376   :  { %v2292_v57 = vpop.f32.mrf.mxu0 }
 0x377   :  { %v1168_v0 = vmul.f32 %v2292_v57, %v2292_v57 }
 0x378   :  { %v2294_v51 = vpop.f32.mrf.mxu0 }
 0x379   :  { %v1143_v54 = vadd.f32 %v2294_v51, %v2290_v63  ;;  %v1166_v5 = vmul.f32 %v2294_v51, %v2294_v51 }
 0x37a   :  { %v2302_v56 = vpop.f32.mrf.mxu0 }
 0x37b   :  { %v1144_v26 = vadd.f32 %v2288_v50, %v1143_v54  ;;  %v1181_v59 = vadd.f32 %v1166_v5, %v1165_v53  ;;  %v1171_v46 = vmul.f32 %v2302_v56, %v2302_v56 }
 0x37c   :  { %v2307_v62 = vpop.f32.mrf.mxu0 }
 0x37d   :  { %v1182_v1 = vadd.f32 %v1181_v59, %v1167_v58  ;;  %v1145_v4 = vadd.f32 %v2292_v57, %v1144_v26  ;;  %v1169_v36 = vmul.f32 %v2307_v62, %v2307_v62 }
 0x37e   :  { %v2312_v15 = vpop.f32.mrf.mxu0 }
 0x37f   :  { %v1146_v39 = vadd.f32 %v1145_v4, %v2307_v62  ;;  %v1183_v6 = vadd.f32 %v1182_v1, %v1168_v0  ;;  %v1172_v45 = vmul.f32 %v2312_v15, %v2312_v15 }
 0x380   :  { %v2317_v18 = vpop.f32.mrf.mxu0 }
 0x381   :  { %v1184_v7 = vadd.f32 %v1183_v6, %v1169_v36  ;;  %v1147_v22 = vadd.f32 %v1146_v39, %v2317_v18  ;;  %v1170_v38 = vmul.f32 %v2317_v18, %v2317_v18 }
 0x382   :  { %v2322_v16 = vpop.f32.mrf.mxu0 }
 0x383   :  { %v1148_v8 = vadd.f32 %v2302_v56, %v1147_v22  ;;  %v1185_v43 = vadd.f32 %v1184_v7, %v1170_v38  ;;  %v1175_v60 = vmul.f32 %v2322_v16, %v2322_v16 }
 0x384   :  { %v1112_v11 = vpop.f32.mrf.mxu0 }
 0x385   :  { %v1186_v29 = vadd.f32 %v1185_v43, %v1171_v46  ;;  %v1149_v49 = vadd.f32 %v2312_v15, %v1148_v8  ;;  %v1173_v48 = vmul.f32 %v1112_v11, %v1112_v11 }
 0x386   :  { %v1631_v9 = vpop.f32.mrf.mxu0 }
 0x387   :  { %v1150_v12 = vadd.f32 %v1149_v49, %v1112_v11  ;;  %v1187_v32 = vadd.f32 %v1186_v29, %v1172_v45  ;;  %v1176_v30 = vmul.f32 %v1631_v9, %v1631_v9  ;;  %v1224_v45 = vld [vmem:[%s2375_s8] sm:$0x1] }
 0x388   :  { %v1115_v61 = vpop.f32.mrf.mxu0 }
 0x389   :  { %v1188_v13 = vadd.f32 %v1187_v32, %v1173_v48  ;;  %v1151_v17 = vadd.f32 %v1150_v12, %v1115_v61  ;;  %v1174_v3 = vmul.f32 %v1115_v61, %v1115_v61 }
 0x38a   :  { %v2330_v10 = vpop.f32.mrf.mxu0 }
 0x38b   :  { %v1152_v19 = vadd.f32 %v2322_v16, %v1151_v17  ;;  %v1189_v25 = vadd.f32 %v1188_v13, %v1174_v3  ;;  %v1179_v37 = vmul.f32 %v2330_v10, %v2330_v10 }
 0x38c   :  { %v1128_v28 = vpop.f32.mrf.mxu0 }
 0x38d   :  { %v1190_v33 = vadd.f32 %v1189_v25, %v1175_v60  ;;  %v1153_v34 = vadd.f32 %v1631_v9, %v1152_v19  ;;  %v1177_v31 = vmul.f32 %v1128_v28, %v1128_v28 }
 0x38e   :  { %v2335_v14 = vpop.f32.mrf.mxu0 }
 0x38f   :  { %v1154_v41 = vadd.f32 %v1153_v34, %v1128_v28  ;;  %v1191_v40 = vadd.f32 %v1190_v33, %v1176_v30  ;;  %v1180_v23 = vmul.f32 %v2335_v14, %v2335_v14 }
 0x390   :  { %v1131_v2 = vpop.f32.mrf.mxu0 }
 0x391   :  { %v1192_v42 = vadd.f32 %v1191_v40, %v1177_v31  ;;  %v1155_v24 = vadd.f32 %v1154_v41, %v1131_v2  ;;  %v1178_v27 = vmul.f32 %v1131_v2, %v1131_v2 }
 0x393   :  { %v1156_v20 = vadd.f32 %v2330_v10, %v1155_v24  ;;  %v1193_v55 = vadd.f32 %v1192_v42, %v1178_v27 }
 0x395   :  { %v1157_v35 = vadd.f32 %v2335_v14, %v1156_v20  ;;  %v1194_v47 = vadd.f32 %v1193_v55, %v1179_v37 }
 0x397   :  { %v1158_v44 = vrot.slane %v1157_v35, 4  ;;  %v1195_v52 = vadd.f32 %v1194_v47, %v1180_v23 }
 0x399   :  { %v1159_v53 = vadd.f32 %v1158_v44, %v1157_v35  ;;  %v1196_v54 = vrot.slane %v1195_v52, 4 }
 0x39b   :  { %v1160_v5 = vrot.slane %v1159_v53, 2  ;;  %v1197_v58 = vadd.f32 %v1196_v54, %v1195_v52 }
 0x39d   :  { %v1161_v26 = vadd.f32 %v1160_v5, %v1159_v53  ;;  %v1198_v59 = vrot.slane %v1197_v58, 2 }
 0x39f   :  { %v1162_v0 = vrot.slane %v1161_v26, 1  ;;  %v1199_v1 = vadd.f32 %v1198_v59, %v1197_v58 }
 0x3a1   :  { %v1163_v4 = vadd.f32 %v1162_v0, %v1161_v26  ;;  %v1200_v39 = vrot.slane %v1199_v1, 1 }
 0x3a3   :  { %v1164_v36 = vmul.f32 0.0078125, %v1163_v4  ;;  %v1201_v6 = vadd.f32 %v1200_v39, %v1199_v1 }
 0x3a5   :  { %v1202_v7 = vmul.f32 0.0078125, %v1201_v6  ;;  %v1203_v22 = vmul.f32 %v1164_v36, %v1164_v36 }
 0x3a7   :  { %v1204_v38 = vsub.f32 %v1202_v7, %v1203_v22 }
 0x3a9   :  { %v1205_v46 = vmax.f32 %v1204_v38, 0.0 }
 0x3ab   :  { %v1206_v8 = vadd.f32 1e-05, %v1205_v46 }
 0x3ad   :  { %1692 = vrsqrt.f32 %v1206_v8 }
 0x3ba   :  { %v1693_v43 = vpop.eup %1692 }
 0x3bb   :  { %v1225_v29 = vmul.f32 %v1693_v43, %v1164_v36  ;;  %v1216_v12 = vmul.f32 %v1693_v43, %v1112_v11  ;;  %v1217_v48 = vmul.f32 %v1693_v43, %v1115_v61  ;;  %v1218_v32 = vmul.f32 %v1693_v43, %v2322_v16 }
 0x3bc   :  { %v1219_v17 = vmul.f32 %v1693_v43, %v1631_v9  ;;  %v1220_v25 = vmul.f32 %v1693_v43, %v1128_v28  ;;  %v1208_v33 = vmul.f32 %v1693_v43, %v2290_v63  ;;  %v1209_v31 = vmul.f32 %v1693_v43, %v2294_v51 }
 0x3bd   :  { %v1226_v49 = vsub.f32 %v1224_v45, %v1225_v29  ;;  %v1210_v40 = vmul.f32 %v1693_v43, %v2288_v50  ;;  %v1221_v11 = vmul.f32 %v1693_v43, %v1131_v2  ;;  %v1211_v16 = vmul.f32 %v1693_v43, %v2292_v57 }
 0x3be   :  { %v1222_v28 = vmul.f32 %v1693_v43, %v2330_v10  ;;  %v1212_v63 = vmul.f32 %v1693_v43, %v2307_v62  ;;  %v1223_v50 = vmul.f32 %v1693_v43, %v2335_v14  ;;  %v1213_v57 = vmul.f32 %v1693_v43, %v2317_v18 }
 0x3bf   :  { %v1231_v13 = vrot.slane %v1226_v49, %v1951_v21  ;;  %v1214_v58 = vmul.f32 %v1693_v43, %v2302_v56  ;;  %v1215_v4 = vmul.f32 %v1693_v43, %v2312_v15 }
 0x3c1   :  { %v1241_v3 = vadd.f32 %v1231_v13, %v1216_v12  ;;  %v1242_v60 = vadd.f32 %v1231_v13, %v1217_v48  ;;  %v1243_v19 = vadd.f32 %v1231_v13, %v1218_v32  ;;  %v1244_v30 = vadd.f32 %v1231_v13, %v1219_v17 }
 0x3c2   :  { %v1245_v61 = vadd.f32 %v1231_v13, %v1220_v25  ;;  %v1233_v9 = vadd.f32 %v1231_v13, %v1208_v33  ;;  %v1234_v24 = vadd.f32 %v1231_v13, %v1209_v31  ;;  %v1235_v27 = vadd.f32 %v1231_v13, %v1210_v40 }
 0x3c3   :  { %v1257_v34 = vmax.f32 %v1241_v3, 0.0  ;;  %v1258_v41 = vmax.f32 %v1242_v60, 0.0  ;;  %v1259_v42 = vmax.f32 %v1243_v19, 0.0  ;;  %v1246_v37 = vadd.f32 %v1231_v13, %v1221_v11 }
 0x3c4   :  { %v1260_v20 = vmax.f32 %v1244_v30, 0.0  ;;  %v1236_v23 = vadd.f32 %v1231_v13, %v1211_v16  ;;  %v1249_v51 = vmax.f32 %v1233_v9, 0.0  ;;  %v1250_v35 = vmax.f32 %v1234_v24, 0.0 }
 0x3c5   :  { %v1278_v21 = vadd.f32 %v1258_v41, %v1257_v34  ;;  %v1247_v2 = vadd.f32 %v1231_v13, %v1222_v28  ;;  %v1261_v47 = vmax.f32 %v1245_v61, 0.0  ;;  %v1237_v52 = vadd.f32 %v1231_v13, %v1212_v63 }
 0x3c6   :  { %v1251_v53 = vmax.f32 %v1235_v27, 0.0  ;;  %v1265_v54 = vadd.f32 %v1250_v35, %v1249_v51  ;;  %v1248_v5 = vadd.f32 %v1231_v13, %v1223_v50  ;;  %v1262_v10 = vmax.f32 %v1246_v37, 0.0 }
 0x3c7   :  { %v1279_v55 = vadd.f32 %v1278_v21, %v1259_v42  ;;  %v1238_v62 = vadd.f32 %v1231_v13, %v1213_v57  ;;  %v1252_v59 = vmax.f32 %v1236_v23, 0.0  ;;  %v1263_v1 = vmax.f32 %v1247_v2, 0.0  ;;  %v1495_v21 = vld [vmem:[%s2377_s10] ss:$0 sm:$0xff]  ;;  %s1723_s10 = smov [#allocation2]  }
 0x3c8   :  { %v1266_v0 = vadd.f32 %v1265_v54, %v1251_v53  ;;  %v1239_v39 = vadd.f32 %v1231_v13, %v1214_v58  ;;  %v1253_v36 = vmax.f32 %v1237_v52, 0.0  ;;  %v1264_v18 = vmax.f32 %v1248_v5, 0.0  ;;  %s1436_s4 = sshll.u32 %s1723_s10, 4  ;;  %s1437_s4 = int_to_ptr.vmem [resolvable:$true] %s1436_s4 }
 0x3c9   :  { %v1280_v44 = vadd.f32 %v1279_v55, %v1260_v20  ;;  %v1240_v22 = vadd.f32 %v1231_v13, %v1215_v4  ;;  %v1254_v38 = vmax.f32 %v1238_v62, 0.0  ;;  %s1698_s1 = scalar_lea.vmem %s1437_s4, 32  ;;  %p1703_p1 = scmp.lt.s32.totalorder %s1437_s4, %s1437_s4 }
 0x3ca   :  { %v1267_v6 = vadd.f32 %v1266_v0, %v1252_v59  ;;  %v1255_v45 = vmax.f32 %v1239_v39, 0.0  ;;  %p1699_p0 = scmp.ne.s32.totalorder %s1437_s4, %s1698_s1  ;;  %p1704_p2 = scmp.lt.s32.totalorder %s1698_s1, %s1698_s1 }
 0x3cb   :  { %v1281_v26 = vadd.f32 %v1280_v44, %v1261_v47  ;;  %v1256_v49 = vmax.f32 %v1240_v22, 0.0 }
 0x3cc   :  { %v1268_v46 = vadd.f32 %v1267_v6, %v1253_v36  ;;  %p1705_p3 = por %p1704_p2, %p1703_p1 }
 0x3cd   :  { %v1282_v14 = vadd.f32 %v1281_v26, %v1262_v10 }
 0x3ce   :  { %v1269_v29 = vadd.f32 %v1268_v46, %v1254_v38  ;;  %p1706_p4 = pnand %p1705_p3, %p1699_p0 }
 0x3cf   :  { %v1283_v7 = vadd.f32 %v1282_v14, %v1263_v1 }
 0x3d0   :  { %v1270_v12 = vadd.f32 %v1269_v29, %v1255_v45 }
 0x3d1   :  { %v1284_v8 = vadd.f32 %v1283_v7, %v1264_v18 }
 0x3d2   :  { %v1271_v32 = vadd.f32 %v1270_v12, %v1256_v49 }
 0x3d3   :  { %v1285_v56 = vrot.slane %v1284_v8, 4 }
 0x3d4   :  { %v1272_v3 = vrot.slane %v1271_v32, 4 }
 0x3d5   :  { %v1286_v48 = vadd.f32 %v1285_v56, %v1284_v8 }
 0x3d6   :  { %v1273_v43 = vadd.f32 %v1272_v3, %v1271_v32 }
 0x3d7   :  { %v1287_v17 = vrot.slane %v1286_v48, 2 }
 0x3d8   :  { %v1274_v19 = vrot.slane %v1273_v43, 2 }
 0x3d9   :  { %v1288_v15 = vadd.f32 %v1287_v17, %v1286_v48 }
 0x3da   :  { %v1275_v30 = vadd.f32 %v1274_v19, %v1273_v43 }
 0x3db   :  { %v1289_v60 = vrot.slane %v1288_v15, 1 }
 0x3dc   :  { %v1276_v13 = vrot.slane %v1275_v30, 1 }
 0x3dd   :  { %v1290_v25 = vadd.f32 %v1289_v60, %v1288_v15 }
 0x3de   :  { %v1277_v34 = vadd.f32 %v1276_v13, %v1275_v30 }
 0x3df   :  { %v1293_v33 = vmul.f32 0.015625, %v1290_v25 }
 0x3e0   :  { %v1292_v31 = vmul.f32 0.015625, %v1277_v34 }
 0x3e1   :  { %v1295_v41 = vpack.c.bf16 %v1293_v33, %v1293_v33 }
 0x3e2   :  { %v1294_v40 = vpack.c.bf16 %v1292_v31, %v1292_v31 }
 0x3e3   :  { %v1322_v11 = vunpack.c.l.b16 %v1295_v41 }
 0x3e4   :  { %v1321_v61 = vunpack.c.l.b16 %v1294_v40 }
 0x3e6   :  { %v1324_v42 = vsel %vm1323_vm5, %v1322_v11, %v1321_v61 }
 0x3e7   :  { %v1325_v16 = vpack.c.b16 %v1324_v42, %v1324_v42 }
 0x3e9   :  { %1653 = vmatmul.mubr.bf16.vlgmr.msra.gmra.mxu1 %v1325_v16 }
 0x4a9   :  { %v1409_v9 = vpop.f32.mrf.mxu1 }
 0x4aa   :  { %v1410_v24 = vadd.f32 %v1495_v21, %v1409_v9 }
 0x4ab   :  { %v1654_v27 = vpop.f32.mrf.mxu1 }
 0x4ac   :  { %v1416_v28 = vsel %vm1415_vm6, %v1410_v24, -inf }
 0x4ad   :  { %1417 = vmax.xlane.f32.xlu0 %v1416_v28  ;;  %v1412_v37 = vpop.f32.mrf.mxu1 }
 0x4af   :  { %v1655_v20 = vpop.f32.mrf.mxu1 }
 0x536   :  { %v1418_v63 = vpop.xlane.xlu0 %1417 }
 0x537   :  { %v1419_v55 = vsub.f32 %v1410_v24, %v1418_v63 }
 0x539   :  { %v1420_v23 = vmul.f32 1.442695, %v1419_v55 }
 0x53b   :  { %1694 = vpow2.f32 %v1420_v23 }
 0x548   :  { %v1695_v51 = vpop.eup %1694 }
 0x549   :  { %v1422_v35 = vsel %vm1415_vm6, %v1695_v51, 0.0 }
 0x54a   :  { %1423 = vadd.xlane.f32.xlu1 %v1422_v35 }
 0x5d3   :  { %v1424_v50 = vpop.xlane.xlu1 %1423 }
 0x5d4   :  { %1696 = vrcp.f32 %v1424_v50 }
 0x5e1   :  { %v1697_v2 = vpop.eup %1696 }
 0x5e2   :  { %v1426_v47 = vmul.f32 %v1697_v2, %v1695_v51 }
 0x5e4   :  { %1427 = vst.msk [vmem:[#allocation2] sm:$0x3] %vm1415_vm6, %v1426_v47 }
 0x5e5   :  { %1709 = shalt.err (!%p1706_p4)
}
 0x5e6   :  { %1439 = dma.vmem_to_hbm [thread:$0]  %s1437_s4, 32, %s2379_s12, [#allocation3]  }
 0x5e7   :  { %1718 = dma.done.wait [#allocation3], 32  }
 0x5e8   :  { %1719 = vsyncadd [#allocation3], 4294967264 }
 0x5e9   :  { %1445 = vsyncpa [#allocation3], 1 }

</bundles_post_ra>
